<compile_context>
chip_gen: v6e
topology: v6e:2x2x1
jax: 0.10.0
libtpu: 0.0.40
codegen_flags: <defaults>
</compile_context>

<pallas_src>
import jax
import jax.numpy as jnp
from jax.experimental import pallas as pl
from jax.experimental.pallas import tpu as pltpu


def _max_pool_kernel(x_ref, y_ref, o_ref):
    # max over the stacked dim of cat([x[:,None], y[:,None]], 1) == maximum(x, y)
    o_ref[...] = jnp.maximum(x_ref[...], y_ref[...])


def _round_up(n, m):
    return ((n + m - 1) // m) * m


def max_pooling(x, y, *, target_block_bytes=1 << 20):
    """Pallas equivalent of MaxPooling.forward(x, y): elementwise max."""
    assert x.shape == y.shape, "shape mismatch"
    assert x.dtype == y.dtype, "dtype mismatch"

    orig_shape = x.shape
    itemsize = x.dtype.itemsize
    total_bytes = x.size * itemsize

    # Tiny inputs: kernel launch + pipeline prologue cost more than the copy;
    # XLA's fused elementwise max is already optimal there.
    if x.ndim < 2 or total_bytes <= (256 << 10):
        return jnp.maximum(x, y)

    # Flatten to 2-D: (rows, lanes) with the last dim on the 128-wide lane axis.
    D = orig_shape[-1]
    B = x.size // D
    x2 = x.reshape(B, D)
    y2 = y.reshape(B, D)

    # Sublane packing granularity per dtype (f32: 8, bf16: 16, int8/fp8: 32).
    sublane = {4: 8, 2: 16, 1: 32}.get(itemsize, 8)

    if D % 128 == 0 and sublane * D * itemsize > target_block_bytes:
        # Very wide rows: also tile the lane axis (keep it a big multiple of 128).
        td = max(128, (target_block_bytes // (sublane * itemsize) // 128) * 128)
        tb = sublane
    else:
        # Common case: full row per block (lane-dense: td == full dim), tile rows.
        td = D
        row_bytes = max(D * itemsize, 1)
        tb = max(sublane, (target_block_bytes // row_bytes) // sublane * sublane)
        tb = min(tb, _round_up(B, sublane))

    block_bytes = tb * td * itemsize
    if block_bytes > (12 << 20):
        # Can't make a lane-dense block that fits the VMEM budget (e.g. an
        # enormous last dim that isn't a multiple of 128): let XLA handle it.
        return jnp.maximum(x, y)

    # Ensure >= 2 grid steps so "parallel" semantics can shard the work across
    # v7x's two TensorCores.
    if pl.cdiv(B, tb) * pl.cdiv(D, td) < 2 and tb > sublane:
        tb = max(sublane, _round_up(tb // 2, sublane))
        block_bytes = tb * td * itemsize

    grid = (pl.cdiv(B, tb), pl.cdiv(D, td))
    spec = pl.BlockSpec((tb, td), lambda i, j: (i, j))

    # 2 inputs + 1 output, double-buffered => ~6x block_bytes; add headroom but
    # stay well under v7x's 64 MiB physical VMEM.
    vmem_limit = int(min(max(8 * block_bytes, 16 << 20), 48 << 20))

    out2 = pl.pallas_call(
        _max_pool_kernel,
        out_shape=jax.ShapeDtypeStruct((B, D), x.dtype),
        grid_spec=pltpu.PrefetchScalarGridSpec(
            num_scalar_prefetch=0,
            grid=grid,
            in_specs=[spec, spec],
            out_specs=spec,
        ),
        compiler_params=pltpu.CompilerParams(
            dimension_semantics=("parallel", "parallel"),
            vmem_limit_bytes=vmem_limit,
        ),
        cost_estimate=pl.CostEstimate(
            flops=B * D,
            transcendentals=0,
            bytes_accessed=3 * B * D * itemsize,
        ),
    )(x2, y2)

    return out2.reshape(orig_shape)


if __name__ == "__main__":
    keys = jax.random.split(jax.random.PRNGKey(0), 4)

    # Small shape consistent with an AdaFocus feature tensor (short-circuit path).
    B_s, D_s = 16, 128
    xs = jax.random.normal(keys[0], (B_s, D_s), dtype=jnp.float32)
    ys = jax.random.normal(keys[1], (B_s, D_s), dtype=jnp.float32)
    out_s = jax.block_until_ready(max_pooling(xs, ys))
    ref_s = jnp.max(jnp.stack([xs, ys], axis=1), axis=1)
    assert out_s.shape == (B_s, D_s)
    assert jnp.allclose(out_s, ref_s), "mismatch vs reference (small)"

    # Larger shape that exercises the tiled Pallas path (still quick to run).
    B_b, D_b = 1024, 1280
    xb = jax.random.normal(keys[2], (B_b, D_b), dtype=jnp.float32)
    yb = jax.random.normal(keys[3], (B_b, D_b), dtype=jnp.float32)
    out_b = jax.block_until_ready(max_pooling(xb, yb))
    ref_b = jnp.max(jnp.stack([xb, yb], axis=1), axis=1)
    assert out_b.shape == (B_b, D_b)
    assert jnp.allclose(out_b, ref_b), "mismatch vs reference (large)"

    print("KERNEL_OK")
</pallas_src>

<mosaic_0001>
module attributes {stable_mosaic.version = 11 : i64} {
  func.func @_max_pool_kernel(%arg0: i32, %arg1: i32, %arg2: memref<200x1280xf32, #tpu.memory_space<vmem>>, %arg3: memref<200x1280xf32, #tpu.memory_space<vmem>>, %arg4: memref<200x1280xf32, #tpu.memory_space<vmem>>) attributes {dimension_semantics = [#tpu.dimension_semantics<parallel>, #tpu.dimension_semantics<parallel>], iteration_bounds = array<i64: 6, 1>, scalar_prefetch = 0 : i64, scratch_operands = 0 : i64, tpu.core_type = #tpu.core_type<tc>, window_params = [{transform_indices = @transform_0, window_bounds = array<i64: 200, 1280>}, {transform_indices = @transform_1, window_bounds = array<i64: 200, 1280>}, {transform_indices = @transform_2, window_bounds = array<i64: 200, 1280>}]} {
    %c0 = arith.constant 0 : index
    %c0_0 = arith.constant 0 : index
    %0 = vector.load %arg2[%c0, %c0_0] : memref<200x1280xf32, #tpu.memory_space<vmem>>, vector<200x1280xf32>
    %c0_1 = arith.constant 0 : index
    %c0_2 = arith.constant 0 : index
    %1 = vector.load %arg3[%c0_1, %c0_2] : memref<200x1280xf32, #tpu.memory_space<vmem>>, vector<200x1280xf32>
    %2 = arith.maximumf %0, %1 : vector<200x1280xf32>
    %c0_3 = arith.constant 0 : index
    %c0_4 = arith.constant 0 : index
    %3 = vector.load %arg4[%c0_3, %c0_4] : memref<200x1280xf32, #tpu.memory_space<vmem>>, vector<200x1280xf32>
    tpu.vector_store %arg4[%c0_3, %c0_4], %2 {strides = array<i32>} : memref<200x1280xf32, #tpu.memory_space<vmem>>, vector<200x1280xf32>,
    return
  }
  func.func @transform_0(%arg0: i32, %arg1: i32) -> (i32, i32) {
    %c0_i32 = arith.constant 0 : i32
    return %arg0, %arg1 : i32, i32
  }
  func.func @transform_1(%arg0: i32, %arg1: i32) -> (i32, i32) {
    %c0_i32 = arith.constant 0 : i32
    return %arg0, %arg1 : i32, i32
  }
  func.func @transform_2(%arg0: i32, %arg1: i32) -> (i32, i32) {
    %c0_i32 = arith.constant 0 : i32
    return %arg0, %arg1 : i32, i32
  }
}

</mosaic_0001>

<bundles_post_ra>
// kernel: tpu_custom_call.1
= control target key start
LH: loop header
LB: loop body
LE: loop exit
PB: predicated region body
PF: predicated region fallthrough
CT: control target
= control target key end

     0   :  { %7 = vsyncpa [#allocation3], 0  ;;  %s2632_s0 = inlined_call_operand.hbm [shape: f32[1024,1280], index: 0, kind: input, shape index: {}]   ;;  %s2633_s1 = inlined_call_operand.hbm [shape: f32[1024,1280], index: 1, kind: input, shape index: {}]   ;;  %s2634_s2 = inlined_call_operand.hbm [shape: f32[1024,1280], index: 2, kind: output, shape index: {}]  }
   0x1   :  { %9 = vsyncpa [#allocation3 + $0x1], 0 }
   0x2   :  { %10 = vsyncpa [#allocation6], 0 }
   0x3   :  { %12 = vsyncpa [#allocation6 + $0x1], 0 }
   0x4   :  { %13 = vsyncpa [#allocation4], 0 }
   0x5   :  { %15 = vsyncpa [#allocation4 + $0x1], 0  ;;  %s1653_s9 = smov 0   ;;  %s1655_s10 = smov 0  }
   0x6   :  { %s1657_s11 = smov 0   ;;  %s1659_s12 = smov 0  }
   0x7   :  { %s1661_s13 = smov 0   ;;  %s1663_s14 = smov 0  }
   0x8 LB: > { %s1398_s15 = sadd.s32 4294967295, %s1627_s14   ;;  %s1399_s16 = sadd.s32 4294967294, %s1627_s14   ;;  %s1627_s14 = sphi %s1663_s14, %s21_s14   ;;  %s1623_s13 = sphi %s1661_s13, %s2644_s13   ;;  %s1619_s12 = sphi %s1659_s12, %s2643_s12   ;;  %s1615_s11 = sphi %s1657_s11, %s2642_s11   ;;  %s1611_s10 = sphi %s1655_s10, %s2641_s10   ;;  %s1607_s9 = sphi %s1653_s9, %s2640_s9  }
   0x9   : > { %s33_s17 = sadd.s32 1, %s1623_s13  ;;  %s42_s18 = sadd.s32 1, %s1615_s11 }
   0xa   : > { %p35_p0 = scmp.ge.s32.totalorder %s33_s17, 6  ;;  %p49_p1 = scmp.ne.s32.totalorder %s1615_s11, %s1611_s10 }
   0xb   : > { %p50_p2 = scmp.eq.s32.totalorder %s1627_s14, 0  ;;  %p55_p3 = scmp.ne.s32.totalorder %s1611_s10, %s1607_s9 }
   0xc   : > { %s2646_s17 = smov (%p35_p0, %s33_s17), 0  ;;  %p56_p5 = scmp.eq.s32.totalorder %s1398_s15, 0 }
   0xd   : > { %p1694_p4 = por %p50_p2, %p49_p1  ;;  %s37_s20 = ssub.s32 %s1623_s13, %s2646_s17 }
   0xe   : > { %p109_p6 = scmp.eq.s32.totalorder %s1398_s15, 5  ;;  %p40_p7 = scmp.eq.s32.totalorder %s37_s20, 0 }
   0xf   : > { %p1700_p8 = por %p56_p5, %p55_p3  ;;  %p115_p10 = scmp.eq.s32.totalorder %s1399_s16, 5 }
  0x10   : > { %p1704_p9 = por %p109_p6, %p49_p1  ;;  %p1401_p12 = scmp.ge.s32.totalorder %s1627_s14, 6 }
  0x11   : > { %s1709_s23 = scalar_select %p40_p7, %s1615_s11, %s42_s18  }
  0x12   : > { %p1711_p11 = por %p115_p10, %p55_p3  ;;  %131 = sbr.rel (%p1401_p12) target bundleno = 93 (0x5d), region = 16 }
  0x14   : > { %s2638_s24 = scalar_select %p1711_p11, 1, 0 }
  0x17   : > { %134 = sbr.rel (!%p1694_p4) target bundleno = 58 (0x3a), region = 20  ;;  %s135_s25 = sand.u32 (%p1694_p4), 1, %s1615_s11  }
  0x18   : > { %s140_s26 = smul.u32 (%p1694_p4), 25, %s1623_s13  ;;  %s1723_s3 = scalar_lea.sflag (%p1694_p4), [#allocation3], %s135_s25 }
  0x19   : > { %s1420_s27 = smul.u32 (%p1694_p4), 2000, %s135_s25 }
  0x1a   : > { %s142_s28 = ssub.s32 (%p1694_p4), 128, %s140_s26 }
  0x1b   : > { %p143_p13 = scmp.lt.s32.totalorder (%p1694_p4), %s142_s28, 25  ;;  %s139_s4 = scalar_lea.vmem (%p1694_p4), [#allocation2], %s1420_s27 }
  0x1d   : > { %s2648_s28 = smov (!%p143_p13, %s142_s28), 25 }
  0x1e   : > { %s1720_s29 = smul.u32 1280, %s2648_s28 }
  0x20   : > { %s148_s30 = ssub.s32 32000, %s1720_s29 }
  0x21   : > { %149 = vsyncadd %s1723_s3, %s148_s30  ;;  %p1404_p0 = scmp.ne.s32.totalorder %s1720_s29, 0  ;;  %s1433_s5 = smul.u32 32000, %s1623_s13 }
  0x22   : > { %s156_s6 = sshll.u32 %s139_s4, 4  ;;  %s1495_s25 = scalar_lea.hbm %s2632_s0, 163840  ;;  %s1733_s6 = int_to_ptr.vmem [resolvable:$true] %s156_s6 }
  0x23   : > { %s1731_s15 = scalar_lea.hbm %s2632_s0, %s1433_s5 }
  0x24   : > { %s1491_s16 = scalar_lea.hbm %s1731_s15, %s1720_s29 }
  0x25   : > { %p1492_p1 = scmp.ne.s32.totalorder %s1731_s15, %s1491_s16  ;;  %p1497_p5 = scmp.lt.s32.totalorder %s1495_s25, %s1491_s16 }
  0x27   : > { %p1493_p2 = pnand %p1492_p1, %p1404_p0 }
  0x29   : > { %p1494_p3 = pneg %p1493_p2 }
  0x2b   : > { %p1499_p6 = pnand %p1497_p5, %p1494_p3 }
  0x2d   : > { %1502 = shalt.err (!%p1499_p6)
}
  0x2e   : > { %s1503_s26 = scalar_lea.vmem %s1733_s6, %s1720_s29  ;;  %s1629_s27 = smov [#allocation2]  }
  0x2f   : > { %p1504_p7 = scmp.ne.s32.totalorder %s1733_s6, %s1503_s26  ;;  %s1507_s28 = sshll.u32 %s1629_s27, 4  ;;  %s1508_s28 = int_to_ptr.vmem [resolvable:$false] %s1507_s28 }
  0x30   : > { %s1509_s30 = scalar_lea.vmem %s1508_s28, 64000  ;;  %p1510_p13 = scmp.lt.s32.totalorder %s1733_s6, %s1508_s28 }
  0x31   : > { %p1505_p10 = pnand %p1504_p7, %p1404_p0  ;;  %p1511_p1 = scmp.lt.s32.totalorder %s1509_s30, %s1503_s26 }
  0x33   : > { %p1506_p12 = pneg %p1505_p10  ;;  %p1512_p2 = por %p1511_p1, %p1510_p13 }
  0x35   : > { %p1513_p11 = pnand %p1512_p2, %p1506_p12 }
  0x37   : > { %1516 = shalt.err (!%p1513_p11)
}
  0x38   : > { %s1630_s4 = smov 1280   ;;  %s1631_s5 = smov 80  }
  0x39   : > { %162 = dma.hbm_to_vmem [thread:$0]  (%p1404_p0), %s1731_s15, %s1720_s29, %s1733_s6, %s1723_s3, %s1630_s4, %s1630_s4, %s1631_s5  }
  0x3a PF: > { %165 = sbr.rel (!%p1694_p4) target bundleno = 93 (0x5d), region = 24  ;;  %s166_s7 = sand.u32 (%p1694_p4), 1, %s1615_s11  }
  0x3b   : > { %s171_s8 = smul.u32 (%p1694_p4), 25, %s1623_s13  ;;  %s1762_s26 = scalar_lea.sflag (%p1694_p4), [#allocation6], %s166_s7 }
  0x3c   : > { %s1422_s16 = smul.u32 (%p1694_p4), 2000, %s166_s7 }
  0x3d   : > { %s173_s18 = ssub.s32 (%p1694_p4), 128, %s171_s8 }
  0x3e   : > { %p174_p11 = scmp.lt.s32.totalorder (%p1694_p4), %s173_s18, 25  ;;  %s170_s29 = scalar_lea.vmem (%p1694_p4), [#allocation5], %s1422_s16 }
  0x40   : > { %s2650_s18 = smov (!%p174_p11, %s173_s18), 25 }
  0x41   : > { %s1759_s20 = smul.u32 1280, %s2650_s18 }
  0x43   : > { %s179_s25 = ssub.s32 32000, %s1759_s20 }
  0x44   : > { %180 = vsyncadd %s1762_s26, %s179_s25  ;;  %p1409_p4 = scmp.ne.s32.totalorder %s1759_s20, 0  ;;  %s1434_s19 = smul.u32 32000, %s1623_s13 }
  0x45   : > { %s187_s3 = sshll.u32 %s170_s29, 4  ;;  %s1521_s5 = scalar_lea.hbm %s2633_s1, 163840  ;;  %s1772_s3 = int_to_ptr.vmem [resolvable:$true] %s187_s3 }
  0x46   : > { %s1770_s27 = scalar_lea.hbm %s2633_s1, %s1434_s19 }
  0x47   : > { %s1517_s28 = scalar_lea.hbm %s1770_s27, %s1759_s20 }
  0x48   : > { %p1518_p0 = scmp.ne.s32.totalorder %s1770_s27, %s1517_s28  ;;  %p1523_p6 = scmp.lt.s32.totalorder %s1521_s5, %s1517_s28 }
  0x4a   : > { %p1519_p3 = pnand %p1518_p0, %p1409_p4 }
  0x4c   : > { %p1520_p5 = pneg %p1519_p3 }
  0x4e   : > { %p1525_p7 = pnand %p1523_p6, %p1520_p5 }
  0x50   : > { %1528 = shalt.err (!%p1525_p7)
}
  0x51   : > { %s1529_s7 = scalar_lea.vmem %s1772_s3, %s1759_s20  ;;  %s1632_s8 = smov [#allocation5]  }
  0x52   : > { %p1530_p10 = scmp.ne.s32.totalorder %s1772_s3, %s1529_s7  ;;  %s1533_s16 = sshll.u32 %s1632_s8, 4  ;;  %s1534_s16 = int_to_ptr.vmem [resolvable:$false] %s1533_s16 }
  0x53   : > { %s1535_s18 = scalar_lea.vmem %s1534_s16, 64000  ;;  %p1536_p1 = scmp.lt.s32.totalorder %s1772_s3, %s1534_s16 }
  0x54   : > { %p1531_p12 = pnand %p1530_p10, %p1409_p4  ;;  %p1537_p2 = scmp.lt.s32.totalorder %s1535_s18, %s1529_s7 }
  0x56   : > { %p1532_p13 = pneg %p1531_p12  ;;  %p1538_p11 = por %p1537_p2, %p1536_p1 }
  0x58   : > { %p1539_p0 = pnand %p1538_p11, %p1532_p13 }
  0x5a   : > { %1542 = shalt.err (!%p1539_p0)
}
  0x5b   : > { %s1633_s25 = smov 1280   ;;  %s1634_s29 = smov 80  }
  0x5c   : > { %193 = dma.hbm_to_vmem [thread:$0]  (%p1409_p4), %s1770_s27, %s1759_s20, %s1772_s3, %s1762_s26, %s1633_s25, %s1633_s25, %s1634_s29  }
  0x5d PF: > { %p1412_p3 = scmp.ge.s32.totalorder %s1627_s14, 1  ;;  %p195_p5 = scmp.lt.s32.totalorder %s1627_s14, 7 }
  0x5f   : > { %p196_p6 = pnand %p1412_p3, %p195_p5 }
  0x60   : > { %s1797_s19 = sand.u32 (!%p196_p6), 1, %s1611_s10  }
  0x61   : > { %199 = sbr.rel (%p196_p6) target bundleno = 331 (0x14b), region = 28  ;;  %s202_s15 = scalar_lea.sflag (!%p196_p6), [#allocation3], %s1797_s19 }
  0x62   : > { %s1424_s6 = smul.u32 (!%p196_p6), 2000, %s1797_s19 }
  0x64   : > { %s1801_s28 = scalar_lea.vmem (!%p196_p6), [#allocation2], %s1424_s6 }
  0x66   : > { %1594 = dma.done.wait (%p1700_p8), %s202_s15, 32000  }
  0x67   : > { %1596 = vsyncadd (%p1700_p8), %s202_s15, 4294935296  ;;  %s211_s20 = scalar_lea.sflag [#allocation6], %s1797_s19  ;;  %s1808_s26 = scalar_lea.vmem [#allocation5], %s1424_s6 }
  0x68   : > { %1598 = dma.done.wait (%p1700_p8), %s211_s20, 32000  }
  0x69   : > { %1600 = vsyncadd (%p1700_p8), %s211_s20, 4294935296  ;;  %v261_v0 = vld [vmem:[%s1801_s28] sm:$0xff]  ;;  %v262_v2 = vld [vmem:[%s1801_s28 + $0x8] sm:$0xff]  ;;  %s1823_s21 = scalar_lea.vmem [#allocation7], %s1424_s6  ;;  %s1262_s3 = scalar_lea.sflag [#allocation4], %s1797_s19 }
  0x6a   : > { %v511_v1 = vld [vmem:[%s1808_s26] sm:$0xff]  ;;  %v512_v4 = vld [vmem:[%s1808_s26 + $0x8] sm:$0xff]  ;;  %v263_v5 = vld [vmem:[%s1801_s28 + $0x10] sm:$0xff]  ;;  %s1269_s27 = smul.u32 (%p1704_p9), 25, %s1619_s12 }
  0x6b   : > { %v761_v3 = vmax.f32 %v261_v0, %v511_v1  ;;  %v513_v6 = vld [vmem:[%s1808_s26 + $0x10] sm:$0xff]  ;;  %v762_v7 = vmax.f32 %v262_v2, %v512_v4  ;;  %v264_v9 = vld [vmem:[%s1801_s28 + $0x18] sm:$0xff]  ;;  %v265_v11 = vld [vmem:[%s1801_s28 + $0x20] sm:$0xff] }
  0x6c   : > { %v763_v8 = vmax.f32 %v263_v5, %v513_v6  ;;  %v514_v10 = vld [vmem:[%s1808_s26 + $0x18] sm:$0xff]  ;;  %v515_v13 = vld [vmem:[%s1808_s26 + $0x20] sm:$0xff]  ;;  %v266_v14 = vld [vmem:[%s1801_s28 + $0x28] sm:$0xff]  ;;  %s1271_s30 = ssub.s32 (%p1704_p9), 128, %s1269_s27 }
  0x6d   : > { %1011 = vst [vmem:[%s1823_s21] sm:$0xff] %v761_v3  ;;  %v764_v12 = vmax.f32 %v264_v9, %v514_v10  ;;  %v516_v15 = vld [vmem:[%s1808_s26 + $0x28] sm:$0xff]  ;;  %1012 = vst [vmem:[%s1823_s21 + $0x8] sm:$0xff] %v762_v7  ;;  %v765_v16 = vmax.f32 %v265_v11, %v515_v13  ;;  %v267_v18 = vld [vmem:[%s1801_s28 + $0x30] sm:$0xff]  ;;  %p1272_p8 = scmp.lt.s32.totalorder (%p1704_p9), %s1271_s30, 25 }
  0x6e   : > { %1013 = vst [vmem:[%s1823_s21 + $0x10] sm:$0xff] %v763_v8  ;;  %v766_v17 = vmax.f32 %v266_v14, %v516_v15  ;;  %v517_v19 = vld [vmem:[%s1808_s26 + $0x30] sm:$0xff]  ;;  %v268_v20 = vld [vmem:[%s1801_s28 + $0x38] sm:$0xff]  ;;  %v269_v23 = vld [vmem:[%s1801_s28 + $0x40] sm:$0xff] }
  0x6f   : > { %1014 = vst [vmem:[%s1823_s21 + $0x18] sm:$0xff] %v764_v12  ;;  %v767_v21 = vmax.f32 %v267_v18, %v517_v19  ;;  %v518_v22 = vld [vmem:[%s1808_s26 + $0x38] sm:$0xff]  ;;  %v519_v24 = vld [vmem:[%s1808_s26 + $0x40] sm:$0xff]  ;;  %1015 = vst [vmem:[%s1823_s21 + $0x20] sm:$0xff] %v765_v16 }
  0x70   : > { %1016 = vst [vmem:[%s1823_s21 + $0x28] sm:$0xff] %v766_v17  ;;  %v768_v25 = vmax.f32 %v268_v20, %v518_v22  ;;  %v769_v26 = vmax.f32 %v269_v23, %v519_v24  ;;  %v270_v27 = vld [vmem:[%s1801_s28 + $0x48] sm:$0xff]  ;;  %v271_v29 = vld [vmem:[%s1801_s28 + $0x50] sm:$0xff]  ;;  %v272_v32 = vld [vmem:[%s1801_s28 + $0x58] sm:$0xff] }
  0x71   : > { %v520_v28 = vld [vmem:[%s1808_s26 + $0x48] sm:$0xff]  ;;  %1017 = vst [vmem:[%s1823_s21 + $0x30] sm:$0xff] %v767_v21  ;;  %v521_v31 = vld [vmem:[%s1808_s26 + $0x50] sm:$0xff]  ;;  %v522_v33 = vld [vmem:[%s1808_s26 + $0x58] sm:$0xff] }
  0x72   : > { %v770_v30 = vmax.f32 %v270_v27, %v520_v28  ;;  %1018 = vst [vmem:[%s1823_s21 + $0x38] sm:$0xff] %v768_v25  ;;  %1019 = vst [vmem:[%s1823_s21 + $0x40] sm:$0xff] %v769_v26  ;;  %v771_v34 = vmax.f32 %v271_v29, %v521_v31  ;;  %v772_v35 = vmax.f32 %v272_v32, %v522_v33  ;;  %v273_v36 = vld [vmem:[%s1801_s28 + $0x60] sm:$0xff]  ;;  %v274_v38 = vld [vmem:[%s1801_s28 + $0x68] sm:$0xff] }
  0x73   : > { %v523_v37 = vld [vmem:[%s1808_s26 + $0x60] sm:$0xff]  ;;  %v524_v40 = vld [vmem:[%s1808_s26 + $0x68] sm:$0xff]  ;;  %v275_v41 = vld [vmem:[%s1801_s28 + $0x70] sm:$0xff] }
  0x74   : > { %1020 = vst [vmem:[%s1823_s21 + $0x48] sm:$0xff] %v770_v30  ;;  %v773_v39 = vmax.f32 %v273_v36, %v523_v37  ;;  %v525_v42 = vld [vmem:[%s1808_s26 + $0x70] sm:$0xff]  ;;  %1021 = vst [vmem:[%s1823_s21 + $0x50] sm:$0xff] %v771_v34  ;;  %v774_v43 = vmax.f32 %v274_v38, %v524_v40  ;;  %v276_v45 = vld [vmem:[%s1801_s28 + $0x78] sm:$0xff] }
  0x75   : > { %1022 = vst [vmem:[%s1823_s21 + $0x58] sm:$0xff] %v772_v35  ;;  %v775_v44 = vmax.f32 %v275_v41, %v525_v42  ;;  %v526_v46 = vld [vmem:[%s1808_s26 + $0x78] sm:$0xff]  ;;  %v277_v47 = vld [vmem:[%s1801_s28 + $0x80] sm:$0xff]  ;;  %v278_v50 = vld [vmem:[%s1801_s28 + $0x88] sm:$0xff] }
  0x76   : > { %1023 = vst [vmem:[%s1823_s21 + $0x60] sm:$0xff] %v773_v39  ;;  %v776_v48 = vmax.f32 %v276_v45, %v526_v46  ;;  %v527_v49 = vld [vmem:[%s1808_s26 + $0x80] sm:$0xff]  ;;  %v528_v51 = vld [vmem:[%s1808_s26 + $0x88] sm:$0xff]  ;;  %1024 = vst [vmem:[%s1823_s21 + $0x68] sm:$0xff] %v774_v43 }
  0x77   : > { %1025 = vst [vmem:[%s1823_s21 + $0x70] sm:$0xff] %v775_v44  ;;  %v777_v52 = vmax.f32 %v277_v47, %v527_v49  ;;  %v778_v53 = vmax.f32 %v278_v50, %v528_v51  ;;  %v279_v54 = vld [vmem:[%s1801_s28 + $0x90] sm:$0xff]  ;;  %v280_v56 = vld [vmem:[%s1801_s28 + $0x98] sm:$0xff]  ;;  %v281_v59 = vld [vmem:[%s1801_s28 + $0xa0] sm:$0xff] }
  0x78   : > { %v529_v55 = vld [vmem:[%s1808_s26 + $0x90] sm:$0xff]  ;;  %1026 = vst [vmem:[%s1823_s21 + $0x78] sm:$0xff] %v776_v48  ;;  %v530_v58 = vld [vmem:[%s1808_s26 + $0x98] sm:$0xff]  ;;  %v531_v60 = vld [vmem:[%s1808_s26 + $0xa0] sm:$0xff] }
  0x79   : > { %v779_v57 = vmax.f32 %v279_v54, %v529_v55  ;;  %1027 = vst [vmem:[%s1823_s21 + $0x80] sm:$0xff] %v777_v52  ;;  %1028 = vst [vmem:[%s1823_s21 + $0x88] sm:$0xff] %v778_v53  ;;  %v780_v61 = vmax.f32 %v280_v56, %v530_v58  ;;  %v781_v62 = vmax.f32 %v281_v59, %v531_v60  ;;  %v282_v63 = vld [vmem:[%s1801_s28 + $0xa8] sm:$0xff]  ;;  %v283_v1 = vld [vmem:[%s1801_s28 + $0xb0] sm:$0xff] }
  0x7a   : > { %v532_v0 = vld [vmem:[%s1808_s26 + $0xa8] sm:$0xff]  ;;  %v533_v3 = vld [vmem:[%s1808_s26 + $0xb0] sm:$0xff]  ;;  %v284_v4 = vld [vmem:[%s1801_s28 + $0xb8] sm:$0xff] }
  0x7b   : > { %1029 = vst [vmem:[%s1823_s21 + $0x90] sm:$0xff] %v779_v57  ;;  %v782_v2 = vmax.f32 %v282_v63, %v532_v0  ;;  %v534_v5 = vld [vmem:[%s1808_s26 + $0xb8] sm:$0xff]  ;;  %1030 = vst [vmem:[%s1823_s21 + $0x98] sm:$0xff] %v780_v61  ;;  %v783_v6 = vmax.f32 %v283_v1, %v533_v3  ;;  %v285_v8 = vld [vmem:[%s1801_s28 + $0xc0] sm:$0xff] }
  0x7c   : > { %1031 = vst [vmem:[%s1823_s21 + $0xa0] sm:$0xff] %v781_v62  ;;  %v784_v7 = vmax.f32 %v284_v4, %v534_v5  ;;  %v535_v9 = vld [vmem:[%s1808_s26 + $0xc0] sm:$0xff]  ;;  %v286_v10 = vld [vmem:[%s1801_s28 + $0xc8] sm:$0xff]  ;;  %v287_v13 = vld [vmem:[%s1801_s28 + $0xd0] sm:$0xff] }
  0x7d   : > { %1032 = vst [vmem:[%s1823_s21 + $0xa8] sm:$0xff] %v782_v2  ;;  %v785_v11 = vmax.f32 %v285_v8, %v535_v9  ;;  %v536_v12 = vld [vmem:[%s1808_s26 + $0xc8] sm:$0xff]  ;;  %v537_v14 = vld [vmem:[%s1808_s26 + $0xd0] sm:$0xff]  ;;  %1033 = vst [vmem:[%s1823_s21 + $0xb0] sm:$0xff] %v783_v6 }
  0x7e   : > { %1034 = vst [vmem:[%s1823_s21 + $0xb8] sm:$0xff] %v784_v7  ;;  %v786_v15 = vmax.f32 %v286_v10, %v536_v12  ;;  %v787_v16 = vmax.f32 %v287_v13, %v537_v14  ;;  %v288_v17 = vld [vmem:[%s1801_s28 + $0xd8] sm:$0xff]  ;;  %v289_v19 = vld [vmem:[%s1801_s28 + $0xe0] sm:$0xff]  ;;  %v290_v22 = vld [vmem:[%s1801_s28 + $0xe8] sm:$0xff] }
  0x7f   : > { %v538_v18 = vld [vmem:[%s1808_s26 + $0xd8] sm:$0xff]  ;;  %1035 = vst [vmem:[%s1823_s21 + $0xc0] sm:$0xff] %v785_v11  ;;  %v539_v21 = vld [vmem:[%s1808_s26 + $0xe0] sm:$0xff]  ;;  %v540_v23 = vld [vmem:[%s1808_s26 + $0xe8] sm:$0xff] }
  0x80   : > { %v788_v20 = vmax.f32 %v288_v17, %v538_v18  ;;  %1036 = vst [vmem:[%s1823_s21 + $0xc8] sm:$0xff] %v786_v15  ;;  %1037 = vst [vmem:[%s1823_s21 + $0xd0] sm:$0xff] %v787_v16  ;;  %v789_v24 = vmax.f32 %v289_v19, %v539_v21  ;;  %v790_v25 = vmax.f32 %v290_v22, %v540_v23  ;;  %v291_v26 = vld [vmem:[%s1801_s28 + $0xf0] sm:$0xff]  ;;  %v292_v28 = vld [vmem:[%s1801_s28 + $0xf8] sm:$0xff] }
  0x81   : > { %v541_v27 = vld [vmem:[%s1808_s26 + $0xf0] sm:$0xff]  ;;  %v542_v30 = vld [vmem:[%s1808_s26 + $0xf8] sm:$0xff]  ;;  %v293_v31 = vld [vmem:[%s1801_s28 + $0x100] sm:$0xff] }
  0x82   : > { %1038 = vst [vmem:[%s1823_s21 + $0xd8] sm:$0xff] %v788_v20  ;;  %v791_v29 = vmax.f32 %v291_v26, %v541_v27  ;;  %v543_v32 = vld [vmem:[%s1808_s26 + $0x100] sm:$0xff]  ;;  %1039 = vst [vmem:[%s1823_s21 + $0xe0] sm:$0xff] %v789_v24  ;;  %v792_v33 = vmax.f32 %v292_v28, %v542_v30  ;;  %v294_v35 = vld [vmem:[%s1801_s28 + $0x108] sm:$0xff] }
  0x83   : > { %1040 = vst [vmem:[%s1823_s21 + $0xe8] sm:$0xff] %v790_v25  ;;  %v793_v34 = vmax.f32 %v293_v31, %v543_v32  ;;  %v544_v36 = vld [vmem:[%s1808_s26 + $0x108] sm:$0xff]  ;;  %v295_v37 = vld [vmem:[%s1801_s28 + $0x110] sm:$0xff]  ;;  %v296_v40 = vld [vmem:[%s1801_s28 + $0x118] sm:$0xff] }
  0x84   : > { %1041 = vst [vmem:[%s1823_s21 + $0xf0] sm:$0xff] %v791_v29  ;;  %v794_v38 = vmax.f32 %v294_v35, %v544_v36  ;;  %v545_v39 = vld [vmem:[%s1808_s26 + $0x110] sm:$0xff]  ;;  %v546_v41 = vld [vmem:[%s1808_s26 + $0x118] sm:$0xff]  ;;  %1042 = vst [vmem:[%s1823_s21 + $0xf8] sm:$0xff] %v792_v33 }
  0x85   : > { %1043 = vst [vmem:[%s1823_s21 + $0x100] sm:$0xff] %v793_v34  ;;  %v795_v42 = vmax.f32 %v295_v37, %v545_v39  ;;  %v796_v43 = vmax.f32 %v296_v40, %v546_v41  ;;  %v297_v44 = vld [vmem:[%s1801_s28 + $0x120] sm:$0xff]  ;;  %v298_v46 = vld [vmem:[%s1801_s28 + $0x128] sm:$0xff]  ;;  %v299_v49 = vld [vmem:[%s1801_s28 + $0x130] sm:$0xff] }
  0x86   : > { %v547_v45 = vld [vmem:[%s1808_s26 + $0x120] sm:$0xff]  ;;  %1044 = vst [vmem:[%s1823_s21 + $0x108] sm:$0xff] %v794_v38  ;;  %v548_v48 = vld [vmem:[%s1808_s26 + $0x128] sm:$0xff]  ;;  %v549_v50 = vld [vmem:[%s1808_s26 + $0x130] sm:$0xff] }
  0x87   : > { %v797_v47 = vmax.f32 %v297_v44, %v547_v45  ;;  %1045 = vst [vmem:[%s1823_s21 + $0x110] sm:$0xff] %v795_v42  ;;  %1046 = vst [vmem:[%s1823_s21 + $0x118] sm:$0xff] %v796_v43  ;;  %v798_v51 = vmax.f32 %v298_v46, %v548_v48  ;;  %v799_v52 = vmax.f32 %v299_v49, %v549_v50  ;;  %v300_v53 = vld [vmem:[%s1801_s28 + $0x138] sm:$0xff]  ;;  %v301_v55 = vld [vmem:[%s1801_s28 + $0x140] sm:$0xff] }
  0x88   : > { %v550_v54 = vld [vmem:[%s1808_s26 + $0x138] sm:$0xff]  ;;  %v551_v57 = vld [vmem:[%s1808_s26 + $0x140] sm:$0xff]  ;;  %v302_v58 = vld [vmem:[%s1801_s28 + $0x148] sm:$0xff] }
  0x89   : > { %1047 = vst [vmem:[%s1823_s21 + $0x120] sm:$0xff] %v797_v47  ;;  %v800_v56 = vmax.f32 %v300_v53, %v550_v54  ;;  %v552_v59 = vld [vmem:[%s1808_s26 + $0x148] sm:$0xff]  ;;  %1048 = vst [vmem:[%s1823_s21 + $0x128] sm:$0xff] %v798_v51  ;;  %v801_v60 = vmax.f32 %v301_v55, %v551_v57  ;;  %v303_v62 = vld [vmem:[%s1801_s28 + $0x150] sm:$0xff] }
  0x8a   : > { %1049 = vst [vmem:[%s1823_s21 + $0x130] sm:$0xff] %v799_v52  ;;  %v802_v61 = vmax.f32 %v302_v58, %v552_v59  ;;  %v553_v63 = vld [vmem:[%s1808_s26 + $0x150] sm:$0xff]  ;;  %v304_v0 = vld [vmem:[%s1801_s28 + $0x158] sm:$0xff]  ;;  %v305_v3 = vld [vmem:[%s1801_s28 + $0x160] sm:$0xff] }
  0x8b   : > { %1050 = vst [vmem:[%s1823_s21 + $0x138] sm:$0xff] %v800_v56  ;;  %v803_v1 = vmax.f32 %v303_v62, %v553_v63  ;;  %v554_v2 = vld [vmem:[%s1808_s26 + $0x158] sm:$0xff]  ;;  %v555_v4 = vld [vmem:[%s1808_s26 + $0x160] sm:$0xff]  ;;  %1051 = vst [vmem:[%s1823_s21 + $0x140] sm:$0xff] %v801_v60 }
  0x8c   : > { %1052 = vst [vmem:[%s1823_s21 + $0x148] sm:$0xff] %v802_v61  ;;  %v804_v5 = vmax.f32 %v304_v0, %v554_v2  ;;  %v805_v6 = vmax.f32 %v305_v3, %v555_v4  ;;  %v306_v7 = vld [vmem:[%s1801_s28 + $0x168] sm:$0xff]  ;;  %v307_v9 = vld [vmem:[%s1801_s28 + $0x170] sm:$0xff]  ;;  %v308_v12 = vld [vmem:[%s1801_s28 + $0x178] sm:$0xff] }
  0x8d   : > { %v556_v8 = vld [vmem:[%s1808_s26 + $0x168] sm:$0xff]  ;;  %1053 = vst [vmem:[%s1823_s21 + $0x150] sm:$0xff] %v803_v1  ;;  %v557_v11 = vld [vmem:[%s1808_s26 + $0x170] sm:$0xff]  ;;  %v558_v13 = vld [vmem:[%s1808_s26 + $0x178] sm:$0xff] }
  0x8e   : > { %v806_v10 = vmax.f32 %v306_v7, %v556_v8  ;;  %1054 = vst [vmem:[%s1823_s21 + $0x158] sm:$0xff] %v804_v5  ;;  %1055 = vst [vmem:[%s1823_s21 + $0x160] sm:$0xff] %v805_v6  ;;  %v807_v14 = vmax.f32 %v307_v9, %v557_v11  ;;  %v808_v15 = vmax.f32 %v308_v12, %v558_v13  ;;  %v309_v16 = vld [vmem:[%s1801_s28 + $0x180] sm:$0xff]  ;;  %v310_v18 = vld [vmem:[%s1801_s28 + $0x188] sm:$0xff] }
  0x8f   : > { %v559_v17 = vld [vmem:[%s1808_s26 + $0x180] sm:$0xff]  ;;  %v560_v20 = vld [vmem:[%s1808_s26 + $0x188] sm:$0xff]  ;;  %v311_v21 = vld [vmem:[%s1801_s28 + $0x190] sm:$0xff] }
  0x90   : > { %1056 = vst [vmem:[%s1823_s21 + $0x168] sm:$0xff] %v806_v10  ;;  %v809_v19 = vmax.f32 %v309_v16, %v559_v17  ;;  %v561_v22 = vld [vmem:[%s1808_s26 + $0x190] sm:$0xff]  ;;  %1057 = vst [vmem:[%s1823_s21 + $0x170] sm:$0xff] %v807_v14  ;;  %v810_v23 = vmax.f32 %v310_v18, %v560_v20  ;;  %v312_v25 = vld [vmem:[%s1801_s28 + $0x198] sm:$0xff] }
  0x91   : > { %1058 = vst [vmem:[%s1823_s21 + $0x178] sm:$0xff] %v808_v15  ;;  %v811_v24 = vmax.f32 %v311_v21, %v561_v22  ;;  %v562_v26 = vld [vmem:[%s1808_s26 + $0x198] sm:$0xff]  ;;  %v313_v27 = vld [vmem:[%s1801_s28 + $0x1a0] sm:$0xff]  ;;  %v314_v30 = vld [vmem:[%s1801_s28 + $0x1a8] sm:$0xff] }
  0x92   : > { %1059 = vst [vmem:[%s1823_s21 + $0x180] sm:$0xff] %v809_v19  ;;  %v812_v28 = vmax.f32 %v312_v25, %v562_v26  ;;  %v563_v29 = vld [vmem:[%s1808_s26 + $0x1a0] sm:$0xff]  ;;  %v564_v31 = vld [vmem:[%s1808_s26 + $0x1a8] sm:$0xff]  ;;  %1060 = vst [vmem:[%s1823_s21 + $0x188] sm:$0xff] %v810_v23 }
  0x93   : > { %1061 = vst [vmem:[%s1823_s21 + $0x190] sm:$0xff] %v811_v24  ;;  %v813_v32 = vmax.f32 %v313_v27, %v563_v29  ;;  %v814_v33 = vmax.f32 %v314_v30, %v564_v31  ;;  %v315_v34 = vld [vmem:[%s1801_s28 + $0x1b0] sm:$0xff]  ;;  %v316_v36 = vld [vmem:[%s1801_s28 + $0x1b8] sm:$0xff]  ;;  %v317_v39 = vld [vmem:[%s1801_s28 + $0x1c0] sm:$0xff] }
  0x94   : > { %v565_v35 = vld [vmem:[%s1808_s26 + $0x1b0] sm:$0xff]  ;;  %1062 = vst [vmem:[%s1823_s21 + $0x198] sm:$0xff] %v812_v28  ;;  %v566_v38 = vld [vmem:[%s1808_s26 + $0x1b8] sm:$0xff]  ;;  %v567_v40 = vld [vmem:[%s1808_s26 + $0x1c0] sm:$0xff] }
  0x95   : > { %v815_v37 = vmax.f32 %v315_v34, %v565_v35  ;;  %1063 = vst [vmem:[%s1823_s21 + $0x1a0] sm:$0xff] %v813_v32  ;;  %1064 = vst [vmem:[%s1823_s21 + $0x1a8] sm:$0xff] %v814_v33  ;;  %v816_v41 = vmax.f32 %v316_v36, %v566_v38  ;;  %v817_v42 = vmax.f32 %v317_v39, %v567_v40  ;;  %v318_v43 = vld [vmem:[%s1801_s28 + $0x1c8] sm:$0xff]  ;;  %v319_v45 = vld [vmem:[%s1801_s28 + $0x1d0] sm:$0xff] }
  0x96   : > { %v568_v44 = vld [vmem:[%s1808_s26 + $0x1c8] sm:$0xff]  ;;  %v569_v47 = vld [vmem:[%s1808_s26 + $0x1d0] sm:$0xff]  ;;  %v320_v48 = vld [vmem:[%s1801_s28 + $0x1d8] sm:$0xff] }
  0x97   : > { %1065 = vst [vmem:[%s1823_s21 + $0x1b0] sm:$0xff] %v815_v37  ;;  %v818_v46 = vmax.f32 %v318_v43, %v568_v44  ;;  %v570_v49 = vld [vmem:[%s1808_s26 + $0x1d8] sm:$0xff]  ;;  %1066 = vst [vmem:[%s1823_s21 + $0x1b8] sm:$0xff] %v816_v41  ;;  %v819_v50 = vmax.f32 %v319_v45, %v569_v47  ;;  %v321_v52 = vld [vmem:[%s1801_s28 + $0x1e0] sm:$0xff] }
  0x98   : > { %1067 = vst [vmem:[%s1823_s21 + $0x1c0] sm:$0xff] %v817_v42  ;;  %v820_v51 = vmax.f32 %v320_v48, %v570_v49  ;;  %v571_v53 = vld [vmem:[%s1808_s26 + $0x1e0] sm:$0xff]  ;;  %v322_v54 = vld [vmem:[%s1801_s28 + $0x1e8] sm:$0xff]  ;;  %v323_v57 = vld [vmem:[%s1801_s28 + $0x1f0] sm:$0xff] }
  0x99   : > { %1068 = vst [vmem:[%s1823_s21 + $0x1c8] sm:$0xff] %v818_v46  ;;  %v821_v55 = vmax.f32 %v321_v52, %v571_v53  ;;  %v572_v56 = vld [vmem:[%s1808_s26 + $0x1e8] sm:$0xff]  ;;  %v573_v58 = vld [vmem:[%s1808_s26 + $0x1f0] sm:$0xff]  ;;  %1069 = vst [vmem:[%s1823_s21 + $0x1d0] sm:$0xff] %v819_v50 }
  0x9a   : > { %1070 = vst [vmem:[%s1823_s21 + $0x1d8] sm:$0xff] %v820_v51  ;;  %v822_v59 = vmax.f32 %v322_v54, %v572_v56  ;;  %v823_v60 = vmax.f32 %v323_v57, %v573_v58  ;;  %v324_v61 = vld [vmem:[%s1801_s28 + $0x1f8] sm:$0xff]  ;;  %v325_v63 = vld [vmem:[%s1801_s28 + $0x200] sm:$0xff]  ;;  %v326_v2 = vld [vmem:[%s1801_s28 + $0x208] sm:$0xff] }
  0x9b   : > { %v574_v62 = vld [vmem:[%s1808_s26 + $0x1f8] sm:$0xff]  ;;  %1071 = vst [vmem:[%s1823_s21 + $0x1e0] sm:$0xff] %v821_v55  ;;  %v575_v1 = vld [vmem:[%s1808_s26 + $0x200] sm:$0xff]  ;;  %v576_v3 = vld [vmem:[%s1808_s26 + $0x208] sm:$0xff] }
  0x9c   : > { %v824_v0 = vmax.f32 %v324_v61, %v574_v62  ;;  %1072 = vst [vmem:[%s1823_s21 + $0x1e8] sm:$0xff] %v822_v59  ;;  %1073 = vst [vmem:[%s1823_s21 + $0x1f0] sm:$0xff] %v823_v60  ;;  %v825_v4 = vmax.f32 %v325_v63, %v575_v1  ;;  %v826_v5 = vmax.f32 %v326_v2, %v576_v3  ;;  %v327_v6 = vld [vmem:[%s1801_s28 + $0x210] sm:$0xff]  ;;  %v328_v8 = vld [vmem:[%s1801_s28 + $0x218] sm:$0xff] }
  0x9d   : > { %v577_v7 = vld [vmem:[%s1808_s26 + $0x210] sm:$0xff]  ;;  %v578_v10 = vld [vmem:[%s1808_s26 + $0x218] sm:$0xff]  ;;  %v329_v11 = vld [vmem:[%s1801_s28 + $0x220] sm:$0xff] }
  0x9e   : > { %1074 = vst [vmem:[%s1823_s21 + $0x1f8] sm:$0xff] %v824_v0  ;;  %v827_v9 = vmax.f32 %v327_v6, %v577_v7  ;;  %v579_v12 = vld [vmem:[%s1808_s26 + $0x220] sm:$0xff]  ;;  %1075 = vst [vmem:[%s1823_s21 + $0x200] sm:$0xff] %v825_v4  ;;  %v828_v13 = vmax.f32 %v328_v8, %v578_v10  ;;  %v330_v15 = vld [vmem:[%s1801_s28 + $0x228] sm:$0xff] }
  0x9f   : > { %1076 = vst [vmem:[%s1823_s21 + $0x208] sm:$0xff] %v826_v5  ;;  %v829_v14 = vmax.f32 %v329_v11, %v579_v12  ;;  %v580_v16 = vld [vmem:[%s1808_s26 + $0x228] sm:$0xff]  ;;  %v331_v17 = vld [vmem:[%s1801_s28 + $0x230] sm:$0xff]  ;;  %v332_v20 = vld [vmem:[%s1801_s28 + $0x238] sm:$0xff] }
  0xa0   : > { %1077 = vst [vmem:[%s1823_s21 + $0x210] sm:$0xff] %v827_v9  ;;  %v830_v18 = vmax.f32 %v330_v15, %v580_v16  ;;  %v581_v19 = vld [vmem:[%s1808_s26 + $0x230] sm:$0xff]  ;;  %v582_v21 = vld [vmem:[%s1808_s26 + $0x238] sm:$0xff]  ;;  %1078 = vst [vmem:[%s1823_s21 + $0x218] sm:$0xff] %v828_v13 }
  0xa1   : > { %1079 = vst [vmem:[%s1823_s21 + $0x220] sm:$0xff] %v829_v14  ;;  %v831_v22 = vmax.f32 %v331_v17, %v581_v19  ;;  %v832_v23 = vmax.f32 %v332_v20, %v582_v21  ;;  %v333_v24 = vld [vmem:[%s1801_s28 + $0x240] sm:$0xff]  ;;  %v334_v26 = vld [vmem:[%s1801_s28 + $0x248] sm:$0xff]  ;;  %v335_v29 = vld [vmem:[%s1801_s28 + $0x250] sm:$0xff] }
  0xa2   : > { %v583_v25 = vld [vmem:[%s1808_s26 + $0x240] sm:$0xff]  ;;  %1080 = vst [vmem:[%s1823_s21 + $0x228] sm:$0xff] %v830_v18  ;;  %v584_v28 = vld [vmem:[%s1808_s26 + $0x248] sm:$0xff]  ;;  %v585_v30 = vld [vmem:[%s1808_s26 + $0x250] sm:$0xff] }
  0xa3   : > { %v833_v27 = vmax.f32 %v333_v24, %v583_v25  ;;  %1081 = vst [vmem:[%s1823_s21 + $0x230] sm:$0xff] %v831_v22  ;;  %1082 = vst [vmem:[%s1823_s21 + $0x238] sm:$0xff] %v832_v23  ;;  %v834_v31 = vmax.f32 %v334_v26, %v584_v28  ;;  %v835_v32 = vmax.f32 %v335_v29, %v585_v30  ;;  %v336_v33 = vld [vmem:[%s1801_s28 + $0x258] sm:$0xff]  ;;  %v337_v35 = vld [vmem:[%s1801_s28 + $0x260] sm:$0xff] }
  0xa4   : > { %v586_v34 = vld [vmem:[%s1808_s26 + $0x258] sm:$0xff]  ;;  %v587_v37 = vld [vmem:[%s1808_s26 + $0x260] sm:$0xff]  ;;  %v338_v38 = vld [vmem:[%s1801_s28 + $0x268] sm:$0xff] }
  0xa5   : > { %1083 = vst [vmem:[%s1823_s21 + $0x240] sm:$0xff] %v833_v27  ;;  %v836_v36 = vmax.f32 %v336_v33, %v586_v34  ;;  %v588_v39 = vld [vmem:[%s1808_s26 + $0x268] sm:$0xff]  ;;  %1084 = vst [vmem:[%s1823_s21 + $0x248] sm:$0xff] %v834_v31  ;;  %v837_v40 = vmax.f32 %v337_v35, %v587_v37  ;;  %v339_v42 = vld [vmem:[%s1801_s28 + $0x270] sm:$0xff] }
  0xa6   : > { %1085 = vst [vmem:[%s1823_s21 + $0x250] sm:$0xff] %v835_v32  ;;  %v838_v41 = vmax.f32 %v338_v38, %v588_v39  ;;  %v589_v43 = vld [vmem:[%s1808_s26 + $0x270] sm:$0xff]  ;;  %v340_v44 = vld [vmem:[%s1801_s28 + $0x278] sm:$0xff]  ;;  %v341_v47 = vld [vmem:[%s1801_s28 + $0x280] sm:$0xff] }
  0xa7   : > { %1086 = vst [vmem:[%s1823_s21 + $0x258] sm:$0xff] %v836_v36  ;;  %v839_v45 = vmax.f32 %v339_v42, %v589_v43  ;;  %v590_v46 = vld [vmem:[%s1808_s26 + $0x278] sm:$0xff]  ;;  %v591_v48 = vld [vmem:[%s1808_s26 + $0x280] sm:$0xff]  ;;  %1087 = vst [vmem:[%s1823_s21 + $0x260] sm:$0xff] %v837_v40 }
  0xa8   : > { %1088 = vst [vmem:[%s1823_s21 + $0x268] sm:$0xff] %v838_v41  ;;  %v840_v49 = vmax.f32 %v340_v44, %v590_v46  ;;  %v841_v50 = vmax.f32 %v341_v47, %v591_v48  ;;  %v342_v51 = vld [vmem:[%s1801_s28 + $0x288] sm:$0xff]  ;;  %v343_v53 = vld [vmem:[%s1801_s28 + $0x290] sm:$0xff]  ;;  %v344_v56 = vld [vmem:[%s1801_s28 + $0x298] sm:$0xff] }
  0xa9   : > { %v592_v52 = vld [vmem:[%s1808_s26 + $0x288] sm:$0xff]  ;;  %1089 = vst [vmem:[%s1823_s21 + $0x270] sm:$0xff] %v839_v45  ;;  %v593_v55 = vld [vmem:[%s1808_s26 + $0x290] sm:$0xff]  ;;  %v594_v57 = vld [vmem:[%s1808_s26 + $0x298] sm:$0xff] }
  0xaa   : > { %v842_v54 = vmax.f32 %v342_v51, %v592_v52  ;;  %1090 = vst [vmem:[%s1823_s21 + $0x278] sm:$0xff] %v840_v49  ;;  %1091 = vst [vmem:[%s1823_s21 + $0x280] sm:$0xff] %v841_v50  ;;  %v843_v58 = vmax.f32 %v343_v53, %v593_v55  ;;  %v844_v59 = vmax.f32 %v344_v56, %v594_v57  ;;  %v345_v60 = vld [vmem:[%s1801_s28 + $0x2a0] sm:$0xff]  ;;  %v346_v62 = vld [vmem:[%s1801_s28 + $0x2a8] sm:$0xff] }
  0xab   : > { %v595_v61 = vld [vmem:[%s1808_s26 + $0x2a0] sm:$0xff]  ;;  %v596_v0 = vld [vmem:[%s1808_s26 + $0x2a8] sm:$0xff]  ;;  %v347_v1 = vld [vmem:[%s1801_s28 + $0x2b0] sm:$0xff] }
  0xac   : > { %1092 = vst [vmem:[%s1823_s21 + $0x288] sm:$0xff] %v842_v54  ;;  %v845_v63 = vmax.f32 %v345_v60, %v595_v61  ;;  %v597_v2 = vld [vmem:[%s1808_s26 + $0x2b0] sm:$0xff]  ;;  %1093 = vst [vmem:[%s1823_s21 + $0x290] sm:$0xff] %v843_v58  ;;  %v846_v3 = vmax.f32 %v346_v62, %v596_v0  ;;  %v348_v5 = vld [vmem:[%s1801_s28 + $0x2b8] sm:$0xff] }
  0xad   : > { %1094 = vst [vmem:[%s1823_s21 + $0x298] sm:$0xff] %v844_v59  ;;  %v847_v4 = vmax.f32 %v347_v1, %v597_v2  ;;  %v598_v6 = vld [vmem:[%s1808_s26 + $0x2b8] sm:$0xff]  ;;  %v349_v7 = vld [vmem:[%s1801_s28 + $0x2c0] sm:$0xff]  ;;  %v350_v10 = vld [vmem:[%s1801_s28 + $0x2c8] sm:$0xff] }
  0xae   : > { %1095 = vst [vmem:[%s1823_s21 + $0x2a0] sm:$0xff] %v845_v63  ;;  %v848_v8 = vmax.f32 %v348_v5, %v598_v6  ;;  %v599_v9 = vld [vmem:[%s1808_s26 + $0x2c0] sm:$0xff]  ;;  %v600_v11 = vld [vmem:[%s1808_s26 + $0x2c8] sm:$0xff]  ;;  %1096 = vst [vmem:[%s1823_s21 + $0x2a8] sm:$0xff] %v846_v3 }
  0xaf   : > { %1097 = vst [vmem:[%s1823_s21 + $0x2b0] sm:$0xff] %v847_v4  ;;  %v849_v12 = vmax.f32 %v349_v7, %v599_v9  ;;  %v850_v13 = vmax.f32 %v350_v10, %v600_v11  ;;  %v351_v14 = vld [vmem:[%s1801_s28 + $0x2d0] sm:$0xff]  ;;  %v352_v16 = vld [vmem:[%s1801_s28 + $0x2d8] sm:$0xff]  ;;  %v353_v19 = vld [vmem:[%s1801_s28 + $0x2e0] sm:$0xff] }
  0xb0   : > { %v601_v15 = vld [vmem:[%s1808_s26 + $0x2d0] sm:$0xff]  ;;  %1098 = vst [vmem:[%s1823_s21 + $0x2b8] sm:$0xff] %v848_v8  ;;  %v602_v18 = vld [vmem:[%s1808_s26 + $0x2d8] sm:$0xff]  ;;  %v603_v20 = vld [vmem:[%s1808_s26 + $0x2e0] sm:$0xff] }
  0xb1   : > { %v851_v17 = vmax.f32 %v351_v14, %v601_v15  ;;  %1099 = vst [vmem:[%s1823_s21 + $0x2c0] sm:$0xff] %v849_v12  ;;  %1100 = vst [vmem:[%s1823_s21 + $0x2c8] sm:$0xff] %v850_v13  ;;  %v852_v21 = vmax.f32 %v352_v16, %v602_v18  ;;  %v853_v22 = vmax.f32 %v353_v19, %v603_v20  ;;  %v354_v23 = vld [vmem:[%s1801_s28 + $0x2e8] sm:$0xff]  ;;  %v355_v25 = vld [vmem:[%s1801_s28 + $0x2f0] sm:$0xff] }
  0xb2   : > { %v604_v24 = vld [vmem:[%s1808_s26 + $0x2e8] sm:$0xff]  ;;  %v605_v27 = vld [vmem:[%s1808_s26 + $0x2f0] sm:$0xff]  ;;  %v356_v28 = vld [vmem:[%s1801_s28 + $0x2f8] sm:$0xff] }
  0xb3   : > { %1101 = vst [vmem:[%s1823_s21 + $0x2d0] sm:$0xff] %v851_v17  ;;  %v854_v26 = vmax.f32 %v354_v23, %v604_v24  ;;  %v606_v29 = vld [vmem:[%s1808_s26 + $0x2f8] sm:$0xff]  ;;  %1102 = vst [vmem:[%s1823_s21 + $0x2d8] sm:$0xff] %v852_v21  ;;  %v855_v30 = vmax.f32 %v355_v25, %v605_v27  ;;  %v357_v32 = vld [vmem:[%s1801_s28 + $0x300] sm:$0xff] }
  0xb4   : > { %1103 = vst [vmem:[%s1823_s21 + $0x2e0] sm:$0xff] %v853_v22  ;;  %v856_v31 = vmax.f32 %v356_v28, %v606_v29  ;;  %v607_v33 = vld [vmem:[%s1808_s26 + $0x300] sm:$0xff]  ;;  %v358_v34 = vld [vmem:[%s1801_s28 + $0x308] sm:$0xff]  ;;  %v359_v37 = vld [vmem:[%s1801_s28 + $0x310] sm:$0xff] }
  0xb5   : > { %1104 = vst [vmem:[%s1823_s21 + $0x2e8] sm:$0xff] %v854_v26  ;;  %v857_v35 = vmax.f32 %v357_v32, %v607_v33  ;;  %v608_v36 = vld [vmem:[%s1808_s26 + $0x308] sm:$0xff]  ;;  %v609_v38 = vld [vmem:[%s1808_s26 + $0x310] sm:$0xff]  ;;  %1105 = vst [vmem:[%s1823_s21 + $0x2f0] sm:$0xff] %v855_v30 }
  0xb6   : > { %1106 = vst [vmem:[%s1823_s21 + $0x2f8] sm:$0xff] %v856_v31  ;;  %v858_v39 = vmax.f32 %v358_v34, %v608_v36  ;;  %v859_v40 = vmax.f32 %v359_v37, %v609_v38  ;;  %v360_v41 = vld [vmem:[%s1801_s28 + $0x318] sm:$0xff]  ;;  %v361_v43 = vld [vmem:[%s1801_s28 + $0x320] sm:$0xff]  ;;  %v362_v46 = vld [vmem:[%s1801_s28 + $0x328] sm:$0xff] }
  0xb7   : > { %v610_v42 = vld [vmem:[%s1808_s26 + $0x318] sm:$0xff]  ;;  %1107 = vst [vmem:[%s1823_s21 + $0x300] sm:$0xff] %v857_v35  ;;  %v611_v45 = vld [vmem:[%s1808_s26 + $0x320] sm:$0xff]  ;;  %v612_v47 = vld [vmem:[%s1808_s26 + $0x328] sm:$0xff] }
  0xb8   : > { %v860_v44 = vmax.f32 %v360_v41, %v610_v42  ;;  %1108 = vst [vmem:[%s1823_s21 + $0x308] sm:$0xff] %v858_v39  ;;  %1109 = vst [vmem:[%s1823_s21 + $0x310] sm:$0xff] %v859_v40  ;;  %v861_v48 = vmax.f32 %v361_v43, %v611_v45  ;;  %v862_v49 = vmax.f32 %v362_v46, %v612_v47  ;;  %v363_v50 = vld [vmem:[%s1801_s28 + $0x330] sm:$0xff]  ;;  %v364_v52 = vld [vmem:[%s1801_s28 + $0x338] sm:$0xff] }
  0xb9   : > { %v613_v51 = vld [vmem:[%s1808_s26 + $0x330] sm:$0xff]  ;;  %v614_v54 = vld [vmem:[%s1808_s26 + $0x338] sm:$0xff]  ;;  %v365_v55 = vld [vmem:[%s1801_s28 + $0x340] sm:$0xff] }
  0xba   : > { %1110 = vst [vmem:[%s1823_s21 + $0x318] sm:$0xff] %v860_v44  ;;  %v863_v53 = vmax.f32 %v363_v50, %v613_v51  ;;  %v615_v56 = vld [vmem:[%s1808_s26 + $0x340] sm:$0xff]  ;;  %1111 = vst [vmem:[%s1823_s21 + $0x320] sm:$0xff] %v861_v48  ;;  %v864_v57 = vmax.f32 %v364_v52, %v614_v54  ;;  %v366_v59 = vld [vmem:[%s1801_s28 + $0x348] sm:$0xff] }
  0xbb   : > { %1112 = vst [vmem:[%s1823_s21 + $0x328] sm:$0xff] %v862_v49  ;;  %v865_v58 = vmax.f32 %v365_v55, %v615_v56  ;;  %v616_v60 = vld [vmem:[%s1808_s26 + $0x348] sm:$0xff]  ;;  %v367_v61 = vld [vmem:[%s1801_s28 + $0x350] sm:$0xff]  ;;  %v368_v0 = vld [vmem:[%s1801_s28 + $0x358] sm:$0xff] }
  0xbc   : > { %1113 = vst [vmem:[%s1823_s21 + $0x330] sm:$0xff] %v863_v53  ;;  %v866_v62 = vmax.f32 %v366_v59, %v616_v60  ;;  %v617_v63 = vld [vmem:[%s1808_s26 + $0x350] sm:$0xff]  ;;  %v618_v1 = vld [vmem:[%s1808_s26 + $0x358] sm:$0xff]  ;;  %1114 = vst [vmem:[%s1823_s21 + $0x338] sm:$0xff] %v864_v57 }
  0xbd   : > { %1115 = vst [vmem:[%s1823_s21 + $0x340] sm:$0xff] %v865_v58  ;;  %v867_v2 = vmax.f32 %v367_v61, %v617_v63  ;;  %v868_v3 = vmax.f32 %v368_v0, %v618_v1  ;;  %v369_v4 = vld [vmem:[%s1801_s28 + $0x360] sm:$0xff]  ;;  %v370_v6 = vld [vmem:[%s1801_s28 + $0x368] sm:$0xff]  ;;  %v371_v9 = vld [vmem:[%s1801_s28 + $0x370] sm:$0xff] }
  0xbe   : > { %v619_v5 = vld [vmem:[%s1808_s26 + $0x360] sm:$0xff]  ;;  %1116 = vst [vmem:[%s1823_s21 + $0x348] sm:$0xff] %v866_v62  ;;  %v620_v8 = vld [vmem:[%s1808_s26 + $0x368] sm:$0xff]  ;;  %v621_v10 = vld [vmem:[%s1808_s26 + $0x370] sm:$0xff] }
  0xbf   : > { %v869_v7 = vmax.f32 %v369_v4, %v619_v5  ;;  %1117 = vst [vmem:[%s1823_s21 + $0x350] sm:$0xff] %v867_v2  ;;  %1118 = vst [vmem:[%s1823_s21 + $0x358] sm:$0xff] %v868_v3  ;;  %v870_v11 = vmax.f32 %v370_v6, %v620_v8  ;;  %v871_v12 = vmax.f32 %v371_v9, %v621_v10  ;;  %v372_v13 = vld [vmem:[%s1801_s28 + $0x378] sm:$0xff]  ;;  %v373_v15 = vld [vmem:[%s1801_s28 + $0x380] sm:$0xff] }
  0xc0   : > { %v622_v14 = vld [vmem:[%s1808_s26 + $0x378] sm:$0xff]  ;;  %v623_v17 = vld [vmem:[%s1808_s26 + $0x380] sm:$0xff]  ;;  %v374_v18 = vld [vmem:[%s1801_s28 + $0x388] sm:$0xff] }
  0xc1   : > { %1119 = vst [vmem:[%s1823_s21 + $0x360] sm:$0xff] %v869_v7  ;;  %v872_v16 = vmax.f32 %v372_v13, %v622_v14  ;;  %v624_v19 = vld [vmem:[%s1808_s26 + $0x388] sm:$0xff]  ;;  %1120 = vst [vmem:[%s1823_s21 + $0x368] sm:$0xff] %v870_v11  ;;  %v873_v20 = vmax.f32 %v373_v15, %v623_v17  ;;  %v375_v22 = vld [vmem:[%s1801_s28 + $0x390] sm:$0xff] }
  0xc2   : > { %1121 = vst [vmem:[%s1823_s21 + $0x370] sm:$0xff] %v871_v12  ;;  %v874_v21 = vmax.f32 %v374_v18, %v624_v19  ;;  %v625_v23 = vld [vmem:[%s1808_s26 + $0x390] sm:$0xff]  ;;  %v376_v24 = vld [vmem:[%s1801_s28 + $0x398] sm:$0xff]  ;;  %v377_v27 = vld [vmem:[%s1801_s28 + $0x3a0] sm:$0xff] }
  0xc3   : > { %1122 = vst [vmem:[%s1823_s21 + $0x378] sm:$0xff] %v872_v16  ;;  %v875_v25 = vmax.f32 %v375_v22, %v625_v23  ;;  %v626_v26 = vld [vmem:[%s1808_s26 + $0x398] sm:$0xff]  ;;  %v627_v28 = vld [vmem:[%s1808_s26 + $0x3a0] sm:$0xff]  ;;  %1123 = vst [vmem:[%s1823_s21 + $0x380] sm:$0xff] %v873_v20 }
  0xc4   : > { %1124 = vst [vmem:[%s1823_s21 + $0x388] sm:$0xff] %v874_v21  ;;  %v876_v29 = vmax.f32 %v376_v24, %v626_v26  ;;  %v877_v30 = vmax.f32 %v377_v27, %v627_v28  ;;  %v378_v31 = vld [vmem:[%s1801_s28 + $0x3a8] sm:$0xff]  ;;  %v379_v33 = vld [vmem:[%s1801_s28 + $0x3b0] sm:$0xff]  ;;  %v380_v36 = vld [vmem:[%s1801_s28 + $0x3b8] sm:$0xff] }
  0xc5   : > { %v628_v32 = vld [vmem:[%s1808_s26 + $0x3a8] sm:$0xff]  ;;  %1125 = vst [vmem:[%s1823_s21 + $0x390] sm:$0xff] %v875_v25  ;;  %v629_v35 = vld [vmem:[%s1808_s26 + $0x3b0] sm:$0xff]  ;;  %v630_v37 = vld [vmem:[%s1808_s26 + $0x3b8] sm:$0xff] }
  0xc6   : > { %v878_v34 = vmax.f32 %v378_v31, %v628_v32  ;;  %1126 = vst [vmem:[%s1823_s21 + $0x398] sm:$0xff] %v876_v29  ;;  %1127 = vst [vmem:[%s1823_s21 + $0x3a0] sm:$0xff] %v877_v30  ;;  %v879_v38 = vmax.f32 %v379_v33, %v629_v35  ;;  %v880_v39 = vmax.f32 %v380_v36, %v630_v37  ;;  %v381_v40 = vld [vmem:[%s1801_s28 + $0x3c0] sm:$0xff]  ;;  %v382_v42 = vld [vmem:[%s1801_s28 + $0x3c8] sm:$0xff] }
  0xc7   : > { %v631_v41 = vld [vmem:[%s1808_s26 + $0x3c0] sm:$0xff]  ;;  %v632_v44 = vld [vmem:[%s1808_s26 + $0x3c8] sm:$0xff]  ;;  %v383_v45 = vld [vmem:[%s1801_s28 + $0x3d0] sm:$0xff] }
  0xc8   : > { %1128 = vst [vmem:[%s1823_s21 + $0x3a8] sm:$0xff] %v878_v34  ;;  %v881_v43 = vmax.f32 %v381_v40, %v631_v41  ;;  %v633_v46 = vld [vmem:[%s1808_s26 + $0x3d0] sm:$0xff]  ;;  %1129 = vst [vmem:[%s1823_s21 + $0x3b0] sm:$0xff] %v879_v38  ;;  %v882_v47 = vmax.f32 %v382_v42, %v632_v44  ;;  %v384_v49 = vld [vmem:[%s1801_s28 + $0x3d8] sm:$0xff] }
  0xc9   : > { %1130 = vst [vmem:[%s1823_s21 + $0x3b8] sm:$0xff] %v880_v39  ;;  %v883_v48 = vmax.f32 %v383_v45, %v633_v46  ;;  %v634_v50 = vld [vmem:[%s1808_s26 + $0x3d8] sm:$0xff]  ;;  %v385_v51 = vld [vmem:[%s1801_s28 + $0x3e0] sm:$0xff]  ;;  %v386_v54 = vld [vmem:[%s1801_s28 + $0x3e8] sm:$0xff] }
  0xca   : > { %1131 = vst [vmem:[%s1823_s21 + $0x3c0] sm:$0xff] %v881_v43  ;;  %v884_v52 = vmax.f32 %v384_v49, %v634_v50  ;;  %v635_v53 = vld [vmem:[%s1808_s26 + $0x3e0] sm:$0xff]  ;;  %v636_v55 = vld [vmem:[%s1808_s26 + $0x3e8] sm:$0xff]  ;;  %1132 = vst [vmem:[%s1823_s21 + $0x3c8] sm:$0xff] %v882_v47 }
  0xcb   : > { %1133 = vst [vmem:[%s1823_s21 + $0x3d0] sm:$0xff] %v883_v48  ;;  %v885_v56 = vmax.f32 %v385_v51, %v635_v53  ;;  %v886_v57 = vmax.f32 %v386_v54, %v636_v55  ;;  %v387_v58 = vld [vmem:[%s1801_s28 + $0x3f0] sm:$0xff]  ;;  %v388_v60 = vld [vmem:[%s1801_s28 + $0x3f8] sm:$0xff]  ;;  %v389_v63 = vld [vmem:[%s1801_s28 + $0x400] sm:$0xff] }
  0xcc   : > { %v637_v59 = vld [vmem:[%s1808_s26 + $0x3f0] sm:$0xff]  ;;  %1134 = vst [vmem:[%s1823_s21 + $0x3d8] sm:$0xff] %v884_v52  ;;  %v638_v62 = vld [vmem:[%s1808_s26 + $0x3f8] sm:$0xff]  ;;  %v639_v0 = vld [vmem:[%s1808_s26 + $0x400] sm:$0xff] }
  0xcd   : > { %v887_v61 = vmax.f32 %v387_v58, %v637_v59  ;;  %1135 = vst [vmem:[%s1823_s21 + $0x3e0] sm:$0xff] %v885_v56  ;;  %1136 = vst [vmem:[%s1823_s21 + $0x3e8] sm:$0xff] %v886_v57  ;;  %v888_v1 = vmax.f32 %v388_v60, %v638_v62  ;;  %v889_v2 = vmax.f32 %v389_v63, %v639_v0  ;;  %v390_v3 = vld [vmem:[%s1801_s28 + $0x408] sm:$0xff]  ;;  %v391_v5 = vld [vmem:[%s1801_s28 + $0x410] sm:$0xff] }
  0xce   : > { %v640_v4 = vld [vmem:[%s1808_s26 + $0x408] sm:$0xff]  ;;  %v641_v7 = vld [vmem:[%s1808_s26 + $0x410] sm:$0xff]  ;;  %v392_v8 = vld [vmem:[%s1801_s28 + $0x418] sm:$0xff] }
  0xcf   : > { %1137 = vst [vmem:[%s1823_s21 + $0x3f0] sm:$0xff] %v887_v61  ;;  %v890_v6 = vmax.f32 %v390_v3, %v640_v4  ;;  %v642_v9 = vld [vmem:[%s1808_s26 + $0x418] sm:$0xff]  ;;  %1138 = vst [vmem:[%s1823_s21 + $0x3f8] sm:$0xff] %v888_v1  ;;  %v891_v10 = vmax.f32 %v391_v5, %v641_v7  ;;  %v393_v12 = vld [vmem:[%s1801_s28 + $0x420] sm:$0xff] }
  0xd0   : > { %1139 = vst [vmem:[%s1823_s21 + $0x400] sm:$0xff] %v889_v2  ;;  %v892_v11 = vmax.f32 %v392_v8, %v642_v9  ;;  %v643_v13 = vld [vmem:[%s1808_s26 + $0x420] sm:$0xff]  ;;  %v394_v14 = vld [vmem:[%s1801_s28 + $0x428] sm:$0xff]  ;;  %v395_v17 = vld [vmem:[%s1801_s28 + $0x430] sm:$0xff] }
  0xd1   : > { %1140 = vst [vmem:[%s1823_s21 + $0x408] sm:$0xff] %v890_v6  ;;  %v893_v15 = vmax.f32 %v393_v12, %v643_v13  ;;  %v644_v16 = vld [vmem:[%s1808_s26 + $0x428] sm:$0xff]  ;;  %v645_v18 = vld [vmem:[%s1808_s26 + $0x430] sm:$0xff]  ;;  %1141 = vst [vmem:[%s1823_s21 + $0x410] sm:$0xff] %v891_v10 }
  0xd2   : > { %1142 = vst [vmem:[%s1823_s21 + $0x418] sm:$0xff] %v892_v11  ;;  %v894_v19 = vmax.f32 %v394_v14, %v644_v16  ;;  %v895_v20 = vmax.f32 %v395_v17, %v645_v18  ;;  %v396_v21 = vld [vmem:[%s1801_s28 + $0x438] sm:$0xff]  ;;  %v397_v23 = vld [vmem:[%s1801_s28 + $0x440] sm:$0xff]  ;;  %v398_v26 = vld [vmem:[%s1801_s28 + $0x448] sm:$0xff] }
  0xd3   : > { %v646_v22 = vld [vmem:[%s1808_s26 + $0x438] sm:$0xff]  ;;  %1143 = vst [vmem:[%s1823_s21 + $0x420] sm:$0xff] %v893_v15  ;;  %v647_v25 = vld [vmem:[%s1808_s26 + $0x440] sm:$0xff]  ;;  %v648_v27 = vld [vmem:[%s1808_s26 + $0x448] sm:$0xff] }
  0xd4   : > { %v896_v24 = vmax.f32 %v396_v21, %v646_v22  ;;  %1144 = vst [vmem:[%s1823_s21 + $0x428] sm:$0xff] %v894_v19  ;;  %1145 = vst [vmem:[%s1823_s21 + $0x430] sm:$0xff] %v895_v20  ;;  %v897_v28 = vmax.f32 %v397_v23, %v647_v25  ;;  %v898_v29 = vmax.f32 %v398_v26, %v648_v27  ;;  %v399_v30 = vld [vmem:[%s1801_s28 + $0x450] sm:$0xff]  ;;  %v400_v32 = vld [vmem:[%s1801_s28 + $0x458] sm:$0xff] }
  0xd5   : > { %v649_v31 = vld [vmem:[%s1808_s26 + $0x450] sm:$0xff]  ;;  %v650_v34 = vld [vmem:[%s1808_s26 + $0x458] sm:$0xff]  ;;  %v401_v35 = vld [vmem:[%s1801_s28 + $0x460] sm:$0xff] }
  0xd6   : > { %1146 = vst [vmem:[%s1823_s21 + $0x438] sm:$0xff] %v896_v24  ;;  %v899_v33 = vmax.f32 %v399_v30, %v649_v31  ;;  %v651_v36 = vld [vmem:[%s1808_s26 + $0x460] sm:$0xff]  ;;  %1147 = vst [vmem:[%s1823_s21 + $0x440] sm:$0xff] %v897_v28  ;;  %v900_v37 = vmax.f32 %v400_v32, %v650_v34  ;;  %v402_v39 = vld [vmem:[%s1801_s28 + $0x468] sm:$0xff] }
  0xd7   : > { %1148 = vst [vmem:[%s1823_s21 + $0x448] sm:$0xff] %v898_v29  ;;  %v901_v38 = vmax.f32 %v401_v35, %v651_v36  ;;  %v652_v40 = vld [vmem:[%s1808_s26 + $0x468] sm:$0xff]  ;;  %v403_v41 = vld [vmem:[%s1801_s28 + $0x470] sm:$0xff]  ;;  %v404_v44 = vld [vmem:[%s1801_s28 + $0x478] sm:$0xff] }
  0xd8   : > { %1149 = vst [vmem:[%s1823_s21 + $0x450] sm:$0xff] %v899_v33  ;;  %v902_v42 = vmax.f32 %v402_v39, %v652_v40  ;;  %v653_v43 = vld [vmem:[%s1808_s26 + $0x470] sm:$0xff]  ;;  %v654_v45 = vld [vmem:[%s1808_s26 + $0x478] sm:$0xff]  ;;  %1150 = vst [vmem:[%s1823_s21 + $0x458] sm:$0xff] %v900_v37 }
  0xd9   : > { %1151 = vst [vmem:[%s1823_s21 + $0x460] sm:$0xff] %v901_v38  ;;  %v903_v46 = vmax.f32 %v403_v41, %v653_v43  ;;  %v904_v47 = vmax.f32 %v404_v44, %v654_v45  ;;  %v405_v48 = vld [vmem:[%s1801_s28 + $0x480] sm:$0xff]  ;;  %v406_v50 = vld [vmem:[%s1801_s28 + $0x488] sm:$0xff]  ;;  %v407_v53 = vld [vmem:[%s1801_s28 + $0x490] sm:$0xff] }
  0xda   : > { %v655_v49 = vld [vmem:[%s1808_s26 + $0x480] sm:$0xff]  ;;  %1152 = vst [vmem:[%s1823_s21 + $0x468] sm:$0xff] %v902_v42  ;;  %v656_v52 = vld [vmem:[%s1808_s26 + $0x488] sm:$0xff]  ;;  %v657_v54 = vld [vmem:[%s1808_s26 + $0x490] sm:$0xff] }
  0xdb   : > { %v905_v51 = vmax.f32 %v405_v48, %v655_v49  ;;  %1153 = vst [vmem:[%s1823_s21 + $0x470] sm:$0xff] %v903_v46  ;;  %1154 = vst [vmem:[%s1823_s21 + $0x478] sm:$0xff] %v904_v47  ;;  %v906_v55 = vmax.f32 %v406_v50, %v656_v52  ;;  %v907_v56 = vmax.f32 %v407_v53, %v657_v54  ;;  %v408_v57 = vld [vmem:[%s1801_s28 + $0x498] sm:$0xff]  ;;  %v409_v59 = vld [vmem:[%s1801_s28 + $0x4a0] sm:$0xff] }
  0xdc   : > { %v658_v58 = vld [vmem:[%s1808_s26 + $0x498] sm:$0xff]  ;;  %v659_v61 = vld [vmem:[%s1808_s26 + $0x4a0] sm:$0xff]  ;;  %v410_v62 = vld [vmem:[%s1801_s28 + $0x4a8] sm:$0xff] }
  0xdd   : > { %1155 = vst [vmem:[%s1823_s21 + $0x480] sm:$0xff] %v905_v51  ;;  %v908_v60 = vmax.f32 %v408_v57, %v658_v58  ;;  %v660_v63 = vld [vmem:[%s1808_s26 + $0x4a8] sm:$0xff]  ;;  %1156 = vst [vmem:[%s1823_s21 + $0x488] sm:$0xff] %v906_v55  ;;  %v909_v0 = vmax.f32 %v409_v59, %v659_v61  ;;  %v411_v2 = vld [vmem:[%s1801_s28 + $0x4b0] sm:$0xff] }
  0xde   : > { %1157 = vst [vmem:[%s1823_s21 + $0x490] sm:$0xff] %v907_v56  ;;  %v910_v1 = vmax.f32 %v410_v62, %v660_v63  ;;  %v661_v3 = vld [vmem:[%s1808_s26 + $0x4b0] sm:$0xff]  ;;  %v412_v4 = vld [vmem:[%s1801_s28 + $0x4b8] sm:$0xff]  ;;  %v413_v7 = vld [vmem:[%s1801_s28 + $0x4c0] sm:$0xff] }
  0xdf   : > { %1158 = vst [vmem:[%s1823_s21 + $0x498] sm:$0xff] %v908_v60  ;;  %v911_v5 = vmax.f32 %v411_v2, %v661_v3  ;;  %v662_v6 = vld [vmem:[%s1808_s26 + $0x4b8] sm:$0xff]  ;;  %v663_v8 = vld [vmem:[%s1808_s26 + $0x4c0] sm:$0xff]  ;;  %1159 = vst [vmem:[%s1823_s21 + $0x4a0] sm:$0xff] %v909_v0 }
  0xe0   : > { %1160 = vst [vmem:[%s1823_s21 + $0x4a8] sm:$0xff] %v910_v1  ;;  %v912_v9 = vmax.f32 %v412_v4, %v662_v6  ;;  %v913_v10 = vmax.f32 %v413_v7, %v663_v8  ;;  %v414_v11 = vld [vmem:[%s1801_s28 + $0x4c8] sm:$0xff]  ;;  %v415_v13 = vld [vmem:[%s1801_s28 + $0x4d0] sm:$0xff]  ;;  %v416_v16 = vld [vmem:[%s1801_s28 + $0x4d8] sm:$0xff] }
  0xe1   : > { %v664_v12 = vld [vmem:[%s1808_s26 + $0x4c8] sm:$0xff]  ;;  %1161 = vst [vmem:[%s1823_s21 + $0x4b0] sm:$0xff] %v911_v5  ;;  %v665_v15 = vld [vmem:[%s1808_s26 + $0x4d0] sm:$0xff]  ;;  %v666_v17 = vld [vmem:[%s1808_s26 + $0x4d8] sm:$0xff] }
  0xe2   : > { %v914_v14 = vmax.f32 %v414_v11, %v664_v12  ;;  %1162 = vst [vmem:[%s1823_s21 + $0x4b8] sm:$0xff] %v912_v9  ;;  %1163 = vst [vmem:[%s1823_s21 + $0x4c0] sm:$0xff] %v913_v10  ;;  %v915_v18 = vmax.f32 %v415_v13, %v665_v15  ;;  %v916_v19 = vmax.f32 %v416_v16, %v666_v17  ;;  %v417_v20 = vld [vmem:[%s1801_s28 + $0x4e0] sm:$0xff]  ;;  %v418_v22 = vld [vmem:[%s1801_s28 + $0x4e8] sm:$0xff] }
  0xe3   : > { %v667_v21 = vld [vmem:[%s1808_s26 + $0x4e0] sm:$0xff]  ;;  %v668_v24 = vld [vmem:[%s1808_s26 + $0x4e8] sm:$0xff]  ;;  %v419_v25 = vld [vmem:[%s1801_s28 + $0x4f0] sm:$0xff] }
  0xe4   : > { %1164 = vst [vmem:[%s1823_s21 + $0x4c8] sm:$0xff] %v914_v14  ;;  %v917_v23 = vmax.f32 %v417_v20, %v667_v21  ;;  %v669_v26 = vld [vmem:[%s1808_s26 + $0x4f0] sm:$0xff]  ;;  %1165 = vst [vmem:[%s1823_s21 + $0x4d0] sm:$0xff] %v915_v18  ;;  %v918_v27 = vmax.f32 %v418_v22, %v668_v24  ;;  %v420_v29 = vld [vmem:[%s1801_s28 + $0x4f8] sm:$0xff] }
  0xe5   : > { %1166 = vst [vmem:[%s1823_s21 + $0x4d8] sm:$0xff] %v916_v19  ;;  %v919_v28 = vmax.f32 %v419_v25, %v669_v26  ;;  %v670_v30 = vld [vmem:[%s1808_s26 + $0x4f8] sm:$0xff]  ;;  %v421_v31 = vld [vmem:[%s1801_s28 + $0x500] sm:$0xff]  ;;  %v422_v34 = vld [vmem:[%s1801_s28 + $0x508] sm:$0xff] }
  0xe6   : > { %1167 = vst [vmem:[%s1823_s21 + $0x4e0] sm:$0xff] %v917_v23  ;;  %v920_v32 = vmax.f32 %v420_v29, %v670_v30  ;;  %v671_v33 = vld [vmem:[%s1808_s26 + $0x500] sm:$0xff]  ;;  %v672_v35 = vld [vmem:[%s1808_s26 + $0x508] sm:$0xff]  ;;  %1168 = vst [vmem:[%s1823_s21 + $0x4e8] sm:$0xff] %v918_v27 }
  0xe7   : > { %1169 = vst [vmem:[%s1823_s21 + $0x4f0] sm:$0xff] %v919_v28  ;;  %v921_v36 = vmax.f32 %v421_v31, %v671_v33  ;;  %v922_v37 = vmax.f32 %v422_v34, %v672_v35  ;;  %v423_v38 = vld [vmem:[%s1801_s28 + $0x510] sm:$0xff]  ;;  %v424_v40 = vld [vmem:[%s1801_s28 + $0x518] sm:$0xff]  ;;  %v425_v43 = vld [vmem:[%s1801_s28 + $0x520] sm:$0xff] }
  0xe8   : > { %v673_v39 = vld [vmem:[%s1808_s26 + $0x510] sm:$0xff]  ;;  %1170 = vst [vmem:[%s1823_s21 + $0x4f8] sm:$0xff] %v920_v32  ;;  %v674_v42 = vld [vmem:[%s1808_s26 + $0x518] sm:$0xff]  ;;  %v675_v44 = vld [vmem:[%s1808_s26 + $0x520] sm:$0xff] }
  0xe9   : > { %v923_v41 = vmax.f32 %v423_v38, %v673_v39  ;;  %1171 = vst [vmem:[%s1823_s21 + $0x500] sm:$0xff] %v921_v36  ;;  %1172 = vst [vmem:[%s1823_s21 + $0x508] sm:$0xff] %v922_v37  ;;  %v924_v45 = vmax.f32 %v424_v40, %v674_v42  ;;  %v925_v46 = vmax.f32 %v425_v43, %v675_v44  ;;  %v426_v47 = vld [vmem:[%s1801_s28 + $0x528] sm:$0xff]  ;;  %v427_v49 = vld [vmem:[%s1801_s28 + $0x530] sm:$0xff] }
  0xea   : > { %v676_v48 = vld [vmem:[%s1808_s26 + $0x528] sm:$0xff]  ;;  %v677_v51 = vld [vmem:[%s1808_s26 + $0x530] sm:$0xff]  ;;  %v428_v52 = vld [vmem:[%s1801_s28 + $0x538] sm:$0xff] }
  0xeb   : > { %1173 = vst [vmem:[%s1823_s21 + $0x510] sm:$0xff] %v923_v41  ;;  %v926_v50 = vmax.f32 %v426_v47, %v676_v48  ;;  %v678_v53 = vld [vmem:[%s1808_s26 + $0x538] sm:$0xff]  ;;  %1174 = vst [vmem:[%s1823_s21 + $0x518] sm:$0xff] %v924_v45  ;;  %v927_v54 = vmax.f32 %v427_v49, %v677_v51  ;;  %v429_v56 = vld [vmem:[%s1801_s28 + $0x540] sm:$0xff] }
  0xec   : > { %1175 = vst [vmem:[%s1823_s21 + $0x520] sm:$0xff] %v925_v46  ;;  %v928_v55 = vmax.f32 %v428_v52, %v678_v53  ;;  %v679_v57 = vld [vmem:[%s1808_s26 + $0x540] sm:$0xff]  ;;  %v430_v58 = vld [vmem:[%s1801_s28 + $0x548] sm:$0xff]  ;;  %v431_v61 = vld [vmem:[%s1801_s28 + $0x550] sm:$0xff] }
  0xed   : > { %1176 = vst [vmem:[%s1823_s21 + $0x528] sm:$0xff] %v926_v50  ;;  %v929_v59 = vmax.f32 %v429_v56, %v679_v57  ;;  %v680_v60 = vld [vmem:[%s1808_s26 + $0x548] sm:$0xff]  ;;  %v681_v62 = vld [vmem:[%s1808_s26 + $0x550] sm:$0xff]  ;;  %1177 = vst [vmem:[%s1823_s21 + $0x530] sm:$0xff] %v927_v54 }
  0xee   : > { %1178 = vst [vmem:[%s1823_s21 + $0x538] sm:$0xff] %v928_v55  ;;  %v930_v63 = vmax.f32 %v430_v58, %v680_v60  ;;  %v931_v0 = vmax.f32 %v431_v61, %v681_v62  ;;  %v432_v1 = vld [vmem:[%s1801_s28 + $0x558] sm:$0xff]  ;;  %v433_v3 = vld [vmem:[%s1801_s28 + $0x560] sm:$0xff]  ;;  %v434_v6 = vld [vmem:[%s1801_s28 + $0x568] sm:$0xff] }
  0xef   : > { %v682_v2 = vld [vmem:[%s1808_s26 + $0x558] sm:$0xff]  ;;  %1179 = vst [vmem:[%s1823_s21 + $0x540] sm:$0xff] %v929_v59  ;;  %v683_v5 = vld [vmem:[%s1808_s26 + $0x560] sm:$0xff]  ;;  %v684_v7 = vld [vmem:[%s1808_s26 + $0x568] sm:$0xff] }
  0xf0   : > { %v932_v4 = vmax.f32 %v432_v1, %v682_v2  ;;  %1180 = vst [vmem:[%s1823_s21 + $0x548] sm:$0xff] %v930_v63  ;;  %1181 = vst [vmem:[%s1823_s21 + $0x550] sm:$0xff] %v931_v0  ;;  %v933_v8 = vmax.f32 %v433_v3, %v683_v5  ;;  %v934_v9 = vmax.f32 %v434_v6, %v684_v7  ;;  %v435_v10 = vld [vmem:[%s1801_s28 + $0x570] sm:$0xff]  ;;  %v436_v12 = vld [vmem:[%s1801_s28 + $0x578] sm:$0xff] }
  0xf1   : > { %v685_v11 = vld [vmem:[%s1808_s26 + $0x570] sm:$0xff]  ;;  %v686_v14 = vld [vmem:[%s1808_s26 + $0x578] sm:$0xff]  ;;  %v437_v15 = vld [vmem:[%s1801_s28 + $0x580] sm:$0xff] }
  0xf2   : > { %1182 = vst [vmem:[%s1823_s21 + $0x558] sm:$0xff] %v932_v4  ;;  %v935_v13 = vmax.f32 %v435_v10, %v685_v11  ;;  %v687_v16 = vld [vmem:[%s1808_s26 + $0x580] sm:$0xff]  ;;  %1183 = vst [vmem:[%s1823_s21 + $0x560] sm:$0xff] %v933_v8  ;;  %v936_v17 = vmax.f32 %v436_v12, %v686_v14  ;;  %v438_v19 = vld [vmem:[%s1801_s28 + $0x588] sm:$0xff] }
  0xf3   : > { %1184 = vst [vmem:[%s1823_s21 + $0x568] sm:$0xff] %v934_v9  ;;  %v937_v18 = vmax.f32 %v437_v15, %v687_v16  ;;  %v688_v20 = vld [vmem:[%s1808_s26 + $0x588] sm:$0xff]  ;;  %v439_v21 = vld [vmem:[%s1801_s28 + $0x590] sm:$0xff]  ;;  %v440_v24 = vld [vmem:[%s1801_s28 + $0x598] sm:$0xff] }
  0xf4   : > { %1185 = vst [vmem:[%s1823_s21 + $0x570] sm:$0xff] %v935_v13  ;;  %v938_v22 = vmax.f32 %v438_v19, %v688_v20  ;;  %v689_v23 = vld [vmem:[%s1808_s26 + $0x590] sm:$0xff]  ;;  %v690_v25 = vld [vmem:[%s1808_s26 + $0x598] sm:$0xff]  ;;  %1186 = vst [vmem:[%s1823_s21 + $0x578] sm:$0xff] %v936_v17 }
  0xf5   : > { %1187 = vst [vmem:[%s1823_s21 + $0x580] sm:$0xff] %v937_v18  ;;  %v939_v26 = vmax.f32 %v439_v21, %v689_v23  ;;  %v940_v27 = vmax.f32 %v440_v24, %v690_v25  ;;  %v441_v28 = vld [vmem:[%s1801_s28 + $0x5a0] sm:$0xff]  ;;  %v442_v30 = vld [vmem:[%s1801_s28 + $0x5a8] sm:$0xff]  ;;  %v443_v33 = vld [vmem:[%s1801_s28 + $0x5b0] sm:$0xff] }
  0xf6   : > { %v691_v29 = vld [vmem:[%s1808_s26 + $0x5a0] sm:$0xff]  ;;  %1188 = vst [vmem:[%s1823_s21 + $0x588] sm:$0xff] %v938_v22  ;;  %v692_v32 = vld [vmem:[%s1808_s26 + $0x5a8] sm:$0xff]  ;;  %v693_v34 = vld [vmem:[%s1808_s26 + $0x5b0] sm:$0xff] }
  0xf7   : > { %v941_v31 = vmax.f32 %v441_v28, %v691_v29  ;;  %1189 = vst [vmem:[%s1823_s21 + $0x590] sm:$0xff] %v939_v26  ;;  %1190 = vst [vmem:[%s1823_s21 + $0x598] sm:$0xff] %v940_v27  ;;  %v942_v35 = vmax.f32 %v442_v30, %v692_v32  ;;  %v943_v36 = vmax.f32 %v443_v33, %v693_v34  ;;  %v444_v37 = vld [vmem:[%s1801_s28 + $0x5b8] sm:$0xff]  ;;  %v445_v39 = vld [vmem:[%s1801_s28 + $0x5c0] sm:$0xff] }
  0xf8   : > { %v694_v38 = vld [vmem:[%s1808_s26 + $0x5b8] sm:$0xff]  ;;  %v695_v41 = vld [vmem:[%s1808_s26 + $0x5c0] sm:$0xff]  ;;  %v446_v42 = vld [vmem:[%s1801_s28 + $0x5c8] sm:$0xff] }
  0xf9   : > { %1191 = vst [vmem:[%s1823_s21 + $0x5a0] sm:$0xff] %v941_v31  ;;  %v944_v40 = vmax.f32 %v444_v37, %v694_v38  ;;  %v696_v43 = vld [vmem:[%s1808_s26 + $0x5c8] sm:$0xff]  ;;  %1192 = vst [vmem:[%s1823_s21 + $0x5a8] sm:$0xff] %v942_v35  ;;  %v945_v44 = vmax.f32 %v445_v39, %v695_v41  ;;  %v447_v46 = vld [vmem:[%s1801_s28 + $0x5d0] sm:$0xff] }
  0xfa   : > { %1193 = vst [vmem:[%s1823_s21 + $0x5b0] sm:$0xff] %v943_v36  ;;  %v946_v45 = vmax.f32 %v446_v42, %v696_v43  ;;  %v697_v47 = vld [vmem:[%s1808_s26 + $0x5d0] sm:$0xff]  ;;  %v448_v48 = vld [vmem:[%s1801_s28 + $0x5d8] sm:$0xff]  ;;  %v449_v51 = vld [vmem:[%s1801_s28 + $0x5e0] sm:$0xff] }
  0xfb   : > { %1194 = vst [vmem:[%s1823_s21 + $0x5b8] sm:$0xff] %v944_v40  ;;  %v947_v49 = vmax.f32 %v447_v46, %v697_v47  ;;  %v698_v50 = vld [vmem:[%s1808_s26 + $0x5d8] sm:$0xff]  ;;  %v699_v52 = vld [vmem:[%s1808_s26 + $0x5e0] sm:$0xff]  ;;  %1195 = vst [vmem:[%s1823_s21 + $0x5c0] sm:$0xff] %v945_v44 }
  0xfc   : > { %1196 = vst [vmem:[%s1823_s21 + $0x5c8] sm:$0xff] %v946_v45  ;;  %v948_v53 = vmax.f32 %v448_v48, %v698_v50  ;;  %v949_v54 = vmax.f32 %v449_v51, %v699_v52  ;;  %v450_v55 = vld [vmem:[%s1801_s28 + $0x5e8] sm:$0xff]  ;;  %v451_v57 = vld [vmem:[%s1801_s28 + $0x5f0] sm:$0xff]  ;;  %v452_v60 = vld [vmem:[%s1801_s28 + $0x5f8] sm:$0xff] }
  0xfd   : > { %v700_v56 = vld [vmem:[%s1808_s26 + $0x5e8] sm:$0xff]  ;;  %1197 = vst [vmem:[%s1823_s21 + $0x5d0] sm:$0xff] %v947_v49  ;;  %v701_v59 = vld [vmem:[%s1808_s26 + $0x5f0] sm:$0xff]  ;;  %v702_v61 = vld [vmem:[%s1808_s26 + $0x5f8] sm:$0xff] }
  0xfe   : > { %v950_v58 = vmax.f32 %v450_v55, %v700_v56  ;;  %1198 = vst [vmem:[%s1823_s21 + $0x5d8] sm:$0xff] %v948_v53  ;;  %1199 = vst [vmem:[%s1823_s21 + $0x5e0] sm:$0xff] %v949_v54  ;;  %v951_v62 = vmax.f32 %v451_v57, %v701_v59  ;;  %v952_v63 = vmax.f32 %v452_v60, %v702_v61  ;;  %v453_v0 = vld [vmem:[%s1801_s28 + $0x600] sm:$0xff]  ;;  %v454_v2 = vld [vmem:[%s1801_s28 + $0x608] sm:$0xff] }
  0xff   : > { %v703_v1 = vld [vmem:[%s1808_s26 + $0x600] sm:$0xff]  ;;  %v704_v4 = vld [vmem:[%s1808_s26 + $0x608] sm:$0xff]  ;;  %v455_v5 = vld [vmem:[%s1801_s28 + $0x610] sm:$0xff] }
 0x100   : > { %1200 = vst [vmem:[%s1823_s21 + $0x5e8] sm:$0xff] %v950_v58  ;;  %v953_v3 = vmax.f32 %v453_v0, %v703_v1  ;;  %v705_v6 = vld [vmem:[%s1808_s26 + $0x610] sm:$0xff]  ;;  %1201 = vst [vmem:[%s1823_s21 + $0x5f0] sm:$0xff] %v951_v62  ;;  %v954_v7 = vmax.f32 %v454_v2, %v704_v4  ;;  %v456_v9 = vld [vmem:[%s1801_s28 + $0x618] sm:$0xff] }
 0x101   : > { %1202 = vst [vmem:[%s1823_s21 + $0x5f8] sm:$0xff] %v952_v63  ;;  %v955_v8 = vmax.f32 %v455_v5, %v705_v6  ;;  %v706_v10 = vld [vmem:[%s1808_s26 + $0x618] sm:$0xff]  ;;  %v457_v11 = vld [vmem:[%s1801_s28 + $0x620] sm:$0xff]  ;;  %v458_v14 = vld [vmem:[%s1801_s28 + $0x628] sm:$0xff] }
 0x102   : > { %1203 = vst [vmem:[%s1823_s21 + $0x600] sm:$0xff] %v953_v3  ;;  %v956_v12 = vmax.f32 %v456_v9, %v706_v10  ;;  %v707_v13 = vld [vmem:[%s1808_s26 + $0x620] sm:$0xff]  ;;  %v708_v15 = vld [vmem:[%s1808_s26 + $0x628] sm:$0xff]  ;;  %1204 = vst [vmem:[%s1823_s21 + $0x608] sm:$0xff] %v954_v7 }
 0x103   : > { %1205 = vst [vmem:[%s1823_s21 + $0x610] sm:$0xff] %v955_v8  ;;  %v957_v16 = vmax.f32 %v457_v11, %v707_v13  ;;  %v958_v17 = vmax.f32 %v458_v14, %v708_v15  ;;  %v459_v18 = vld [vmem:[%s1801_s28 + $0x630] sm:$0xff]  ;;  %v460_v20 = vld [vmem:[%s1801_s28 + $0x638] sm:$0xff]  ;;  %v461_v23 = vld [vmem:[%s1801_s28 + $0x640] sm:$0xff] }
 0x104   : > { %v709_v19 = vld [vmem:[%s1808_s26 + $0x630] sm:$0xff]  ;;  %1206 = vst [vmem:[%s1823_s21 + $0x618] sm:$0xff] %v956_v12  ;;  %v710_v22 = vld [vmem:[%s1808_s26 + $0x638] sm:$0xff]  ;;  %v711_v24 = vld [vmem:[%s1808_s26 + $0x640] sm:$0xff] }
 0x105   : > { %v959_v21 = vmax.f32 %v459_v18, %v709_v19  ;;  %1207 = vst [vmem:[%s1823_s21 + $0x620] sm:$0xff] %v957_v16  ;;  %1208 = vst [vmem:[%s1823_s21 + $0x628] sm:$0xff] %v958_v17  ;;  %v960_v25 = vmax.f32 %v460_v20, %v710_v22  ;;  %v961_v26 = vmax.f32 %v461_v23, %v711_v24  ;;  %v462_v27 = vld [vmem:[%s1801_s28 + $0x648] sm:$0xff]  ;;  %v463_v29 = vld [vmem:[%s1801_s28 + $0x650] sm:$0xff] }
 0x106   : > { %v712_v28 = vld [vmem:[%s1808_s26 + $0x648] sm:$0xff]  ;;  %v713_v31 = vld [vmem:[%s1808_s26 + $0x650] sm:$0xff]  ;;  %v464_v32 = vld [vmem:[%s1801_s28 + $0x658] sm:$0xff] }
 0x107   : > { %1209 = vst [vmem:[%s1823_s21 + $0x630] sm:$0xff] %v959_v21  ;;  %v962_v30 = vmax.f32 %v462_v27, %v712_v28  ;;  %v714_v33 = vld [vmem:[%s1808_s26 + $0x658] sm:$0xff]  ;;  %1210 = vst [vmem:[%s1823_s21 + $0x638] sm:$0xff] %v960_v25  ;;  %v963_v34 = vmax.f32 %v463_v29, %v713_v31  ;;  %v465_v36 = vld [vmem:[%s1801_s28 + $0x660] sm:$0xff] }
 0x108   : > { %1211 = vst [vmem:[%s1823_s21 + $0x640] sm:$0xff] %v961_v26  ;;  %v964_v35 = vmax.f32 %v464_v32, %v714_v33  ;;  %v715_v37 = vld [vmem:[%s1808_s26 + $0x660] sm:$0xff]  ;;  %v466_v38 = vld [vmem:[%s1801_s28 + $0x668] sm:$0xff]  ;;  %v467_v41 = vld [vmem:[%s1801_s28 + $0x670] sm:$0xff] }
 0x109   : > { %1212 = vst [vmem:[%s1823_s21 + $0x648] sm:$0xff] %v962_v30  ;;  %v965_v39 = vmax.f32 %v465_v36, %v715_v37  ;;  %v716_v40 = vld [vmem:[%s1808_s26 + $0x668] sm:$0xff]  ;;  %v717_v42 = vld [vmem:[%s1808_s26 + $0x670] sm:$0xff]  ;;  %1213 = vst [vmem:[%s1823_s21 + $0x650] sm:$0xff] %v963_v34 }
 0x10a   : > { %1214 = vst [vmem:[%s1823_s21 + $0x658] sm:$0xff] %v964_v35  ;;  %v966_v43 = vmax.f32 %v466_v38, %v716_v40  ;;  %v967_v44 = vmax.f32 %v467_v41, %v717_v42  ;;  %v468_v45 = vld [vmem:[%s1801_s28 + $0x678] sm:$0xff]  ;;  %v469_v47 = vld [vmem:[%s1801_s28 + $0x680] sm:$0xff]  ;;  %v470_v50 = vld [vmem:[%s1801_s28 + $0x688] sm:$0xff] }
 0x10b   : > { %v718_v46 = vld [vmem:[%s1808_s26 + $0x678] sm:$0xff]  ;;  %1215 = vst [vmem:[%s1823_s21 + $0x660] sm:$0xff] %v965_v39  ;;  %v719_v49 = vld [vmem:[%s1808_s26 + $0x680] sm:$0xff]  ;;  %v720_v51 = vld [vmem:[%s1808_s26 + $0x688] sm:$0xff] }
 0x10c   : > { %v968_v48 = vmax.f32 %v468_v45, %v718_v46  ;;  %1216 = vst [vmem:[%s1823_s21 + $0x668] sm:$0xff] %v966_v43  ;;  %1217 = vst [vmem:[%s1823_s21 + $0x670] sm:$0xff] %v967_v44  ;;  %v969_v52 = vmax.f32 %v469_v47, %v719_v49  ;;  %v970_v53 = vmax.f32 %v470_v50, %v720_v51  ;;  %v471_v54 = vld [vmem:[%s1801_s28 + $0x690] sm:$0xff]  ;;  %v472_v56 = vld [vmem:[%s1801_s28 + $0x698] sm:$0xff] }
 0x10d   : > { %v721_v55 = vld [vmem:[%s1808_s26 + $0x690] sm:$0xff]  ;;  %v722_v58 = vld [vmem:[%s1808_s26 + $0x698] sm:$0xff]  ;;  %v473_v59 = vld [vmem:[%s1801_s28 + $0x6a0] sm:$0xff] }
 0x10e   : > { %1218 = vst [vmem:[%s1823_s21 + $0x678] sm:$0xff] %v968_v48  ;;  %v971_v57 = vmax.f32 %v471_v54, %v721_v55  ;;  %v723_v60 = vld [vmem:[%s1808_s26 + $0x6a0] sm:$0xff]  ;;  %1219 = vst [vmem:[%s1823_s21 + $0x680] sm:$0xff] %v969_v52  ;;  %v972_v61 = vmax.f32 %v472_v56, %v722_v58  ;;  %v474_v63 = vld [vmem:[%s1801_s28 + $0x6a8] sm:$0xff] }
 0x10f   : > { %1220 = vst [vmem:[%s1823_s21 + $0x688] sm:$0xff] %v970_v53  ;;  %v973_v62 = vmax.f32 %v473_v59, %v723_v60  ;;  %v724_v0 = vld [vmem:[%s1808_s26 + $0x6a8] sm:$0xff]  ;;  %v475_v1 = vld [vmem:[%s1801_s28 + $0x6b0] sm:$0xff]  ;;  %v476_v4 = vld [vmem:[%s1801_s28 + $0x6b8] sm:$0xff] }
 0x110   : > { %1221 = vst [vmem:[%s1823_s21 + $0x690] sm:$0xff] %v971_v57  ;;  %v974_v2 = vmax.f32 %v474_v63, %v724_v0  ;;  %v725_v3 = vld [vmem:[%s1808_s26 + $0x6b0] sm:$0xff]  ;;  %v726_v5 = vld [vmem:[%s1808_s26 + $0x6b8] sm:$0xff]  ;;  %1222 = vst [vmem:[%s1823_s21 + $0x698] sm:$0xff] %v972_v61 }
 0x111   : > { %1223 = vst [vmem:[%s1823_s21 + $0x6a0] sm:$0xff] %v973_v62  ;;  %v975_v6 = vmax.f32 %v475_v1, %v725_v3  ;;  %v976_v7 = vmax.f32 %v476_v4, %v726_v5  ;;  %v477_v8 = vld [vmem:[%s1801_s28 + $0x6c0] sm:$0xff]  ;;  %v478_v10 = vld [vmem:[%s1801_s28 + $0x6c8] sm:$0xff]  ;;  %v479_v13 = vld [vmem:[%s1801_s28 + $0x6d0] sm:$0xff] }
 0x112   : > { %v727_v9 = vld [vmem:[%s1808_s26 + $0x6c0] sm:$0xff]  ;;  %1224 = vst [vmem:[%s1823_s21 + $0x6a8] sm:$0xff] %v974_v2  ;;  %v728_v12 = vld [vmem:[%s1808_s26 + $0x6c8] sm:$0xff]  ;;  %v729_v14 = vld [vmem:[%s1808_s26 + $0x6d0] sm:$0xff] }
 0x113   : > { %v977_v11 = vmax.f32 %v477_v8, %v727_v9  ;;  %1225 = vst [vmem:[%s1823_s21 + $0x6b0] sm:$0xff] %v975_v6  ;;  %1226 = vst [vmem:[%s1823_s21 + $0x6b8] sm:$0xff] %v976_v7  ;;  %v978_v15 = vmax.f32 %v478_v10, %v728_v12  ;;  %v979_v16 = vmax.f32 %v479_v13, %v729_v14  ;;  %v480_v17 = vld [vmem:[%s1801_s28 + $0x6d8] sm:$0xff]  ;;  %v481_v19 = vld [vmem:[%s1801_s28 + $0x6e0] sm:$0xff] }
 0x114   : > { %v730_v18 = vld [vmem:[%s1808_s26 + $0x6d8] sm:$0xff]  ;;  %v731_v21 = vld [vmem:[%s1808_s26 + $0x6e0] sm:$0xff]  ;;  %v482_v22 = vld [vmem:[%s1801_s28 + $0x6e8] sm:$0xff] }
 0x115   : > { %1227 = vst [vmem:[%s1823_s21 + $0x6c0] sm:$0xff] %v977_v11  ;;  %v980_v20 = vmax.f32 %v480_v17, %v730_v18  ;;  %v732_v23 = vld [vmem:[%s1808_s26 + $0x6e8] sm:$0xff]  ;;  %1228 = vst [vmem:[%s1823_s21 + $0x6c8] sm:$0xff] %v978_v15  ;;  %v981_v24 = vmax.f32 %v481_v19, %v731_v21  ;;  %v483_v26 = vld [vmem:[%s1801_s28 + $0x6f0] sm:$0xff] }
 0x116   : > { %1229 = vst [vmem:[%s1823_s21 + $0x6d0] sm:$0xff] %v979_v16  ;;  %v982_v25 = vmax.f32 %v482_v22, %v732_v23  ;;  %v733_v27 = vld [vmem:[%s1808_s26 + $0x6f0] sm:$0xff]  ;;  %v484_v28 = vld [vmem:[%s1801_s28 + $0x6f8] sm:$0xff]  ;;  %v485_v31 = vld [vmem:[%s1801_s28 + $0x700] sm:$0xff] }
 0x117   : > { %1230 = vst [vmem:[%s1823_s21 + $0x6d8] sm:$0xff] %v980_v20  ;;  %v983_v29 = vmax.f32 %v483_v26, %v733_v27  ;;  %v734_v30 = vld [vmem:[%s1808_s26 + $0x6f8] sm:$0xff]  ;;  %v735_v32 = vld [vmem:[%s1808_s26 + $0x700] sm:$0xff]  ;;  %1231 = vst [vmem:[%s1823_s21 + $0x6e0] sm:$0xff] %v981_v24 }
 0x118   : > { %1232 = vst [vmem:[%s1823_s21 + $0x6e8] sm:$0xff] %v982_v25  ;;  %v984_v33 = vmax.f32 %v484_v28, %v734_v30  ;;  %v985_v34 = vmax.f32 %v485_v31, %v735_v32  ;;  %v486_v35 = vld [vmem:[%s1801_s28 + $0x708] sm:$0xff]  ;;  %v487_v37 = vld [vmem:[%s1801_s28 + $0x710] sm:$0xff]  ;;  %v488_v40 = vld [vmem:[%s1801_s28 + $0x718] sm:$0xff] }
 0x119   : > { %v736_v36 = vld [vmem:[%s1808_s26 + $0x708] sm:$0xff]  ;;  %1233 = vst [vmem:[%s1823_s21 + $0x6f0] sm:$0xff] %v983_v29  ;;  %v737_v39 = vld [vmem:[%s1808_s26 + $0x710] sm:$0xff]  ;;  %v738_v41 = vld [vmem:[%s1808_s26 + $0x718] sm:$0xff] }
 0x11a   : > { %v986_v38 = vmax.f32 %v486_v35, %v736_v36  ;;  %1234 = vst [vmem:[%s1823_s21 + $0x6f8] sm:$0xff] %v984_v33  ;;  %1235 = vst [vmem:[%s1823_s21 + $0x700] sm:$0xff] %v985_v34  ;;  %v987_v42 = vmax.f32 %v487_v37, %v737_v39  ;;  %v988_v43 = vmax.f32 %v488_v40, %v738_v41  ;;  %v489_v44 = vld [vmem:[%s1801_s28 + $0x720] sm:$0xff]  ;;  %v490_v46 = vld [vmem:[%s1801_s28 + $0x728] sm:$0xff] }
 0x11b   : > { %v739_v45 = vld [vmem:[%s1808_s26 + $0x720] sm:$0xff]  ;;  %v740_v48 = vld [vmem:[%s1808_s26 + $0x728] sm:$0xff]  ;;  %v491_v49 = vld [vmem:[%s1801_s28 + $0x730] sm:$0xff] }
 0x11c   : > { %1236 = vst [vmem:[%s1823_s21 + $0x708] sm:$0xff] %v986_v38  ;;  %v989_v47 = vmax.f32 %v489_v44, %v739_v45  ;;  %v741_v50 = vld [vmem:[%s1808_s26 + $0x730] sm:$0xff]  ;;  %1237 = vst [vmem:[%s1823_s21 + $0x710] sm:$0xff] %v987_v42  ;;  %v990_v51 = vmax.f32 %v490_v46, %v740_v48  ;;  %v492_v53 = vld [vmem:[%s1801_s28 + $0x738] sm:$0xff] }
 0x11d   : > { %1238 = vst [vmem:[%s1823_s21 + $0x718] sm:$0xff] %v988_v43  ;;  %v991_v52 = vmax.f32 %v491_v49, %v741_v50  ;;  %v742_v54 = vld [vmem:[%s1808_s26 + $0x738] sm:$0xff]  ;;  %v493_v55 = vld [vmem:[%s1801_s28 + $0x740] sm:$0xff]  ;;  %v494_v58 = vld [vmem:[%s1801_s28 + $0x748] sm:$0xff] }
 0x11e   : > { %1239 = vst [vmem:[%s1823_s21 + $0x720] sm:$0xff] %v989_v47  ;;  %v992_v56 = vmax.f32 %v492_v53, %v742_v54  ;;  %v743_v57 = vld [vmem:[%s1808_s26 + $0x740] sm:$0xff]  ;;  %v744_v59 = vld [vmem:[%s1808_s26 + $0x748] sm:$0xff]  ;;  %1240 = vst [vmem:[%s1823_s21 + $0x728] sm:$0xff] %v990_v51 }
 0x11f   : > { %1241 = vst [vmem:[%s1823_s21 + $0x730] sm:$0xff] %v991_v52  ;;  %v993_v60 = vmax.f32 %v493_v55, %v743_v57  ;;  %v994_v61 = vmax.f32 %v494_v58, %v744_v59  ;;  %v495_v62 = vld [vmem:[%s1801_s28 + $0x750] sm:$0xff]  ;;  %v496_v0 = vld [vmem:[%s1801_s28 + $0x758] sm:$0xff]  ;;  %v497_v3 = vld [vmem:[%s1801_s28 + $0x760] sm:$0xff] }
 0x120   : > { %v745_v63 = vld [vmem:[%s1808_s26 + $0x750] sm:$0xff]  ;;  %1242 = vst [vmem:[%s1823_s21 + $0x738] sm:$0xff] %v992_v56  ;;  %v746_v2 = vld [vmem:[%s1808_s26 + $0x758] sm:$0xff]  ;;  %v747_v4 = vld [vmem:[%s1808_s26 + $0x760] sm:$0xff] }
 0x121   : > { %v995_v1 = vmax.f32 %v495_v62, %v745_v63  ;;  %1243 = vst [vmem:[%s1823_s21 + $0x740] sm:$0xff] %v993_v60  ;;  %1244 = vst [vmem:[%s1823_s21 + $0x748] sm:$0xff] %v994_v61  ;;  %v996_v5 = vmax.f32 %v496_v0, %v746_v2  ;;  %v997_v6 = vmax.f32 %v497_v3, %v747_v4  ;;  %v498_v7 = vld [vmem:[%s1801_s28 + $0x768] sm:$0xff]  ;;  %v499_v9 = vld [vmem:[%s1801_s28 + $0x770] sm:$0xff] }
 0x122   : > { %v748_v8 = vld [vmem:[%s1808_s26 + $0x768] sm:$0xff]  ;;  %v749_v11 = vld [vmem:[%s1808_s26 + $0x770] sm:$0xff]  ;;  %v500_v12 = vld [vmem:[%s1801_s28 + $0x778] sm:$0xff] }
 0x123   : > { %1245 = vst [vmem:[%s1823_s21 + $0x750] sm:$0xff] %v995_v1  ;;  %v998_v10 = vmax.f32 %v498_v7, %v748_v8  ;;  %v750_v13 = vld [vmem:[%s1808_s26 + $0x778] sm:$0xff]  ;;  %1246 = vst [vmem:[%s1823_s21 + $0x758] sm:$0xff] %v996_v5  ;;  %v999_v14 = vmax.f32 %v499_v9, %v749_v11  ;;  %v501_v16 = vld [vmem:[%s1801_s28 + $0x780] sm:$0xff] }
 0x124   : > { %1247 = vst [vmem:[%s1823_s21 + $0x760] sm:$0xff] %v997_v6  ;;  %v1000_v15 = vmax.f32 %v500_v12, %v750_v13  ;;  %v751_v17 = vld [vmem:[%s1808_s26 + $0x780] sm:$0xff]  ;;  %v502_v18 = vld [vmem:[%s1801_s28 + $0x788] sm:$0xff]  ;;  %v503_v21 = vld [vmem:[%s1801_s28 + $0x790] sm:$0xff] }
 0x125   : > { %1248 = vst [vmem:[%s1823_s21 + $0x768] sm:$0xff] %v998_v10  ;;  %v1001_v19 = vmax.f32 %v501_v16, %v751_v17  ;;  %v752_v20 = vld [vmem:[%s1808_s26 + $0x788] sm:$0xff]  ;;  %v753_v22 = vld [vmem:[%s1808_s26 + $0x790] sm:$0xff]  ;;  %1249 = vst [vmem:[%s1823_s21 + $0x770] sm:$0xff] %v999_v14 }
 0x126   : > { %1250 = vst [vmem:[%s1823_s21 + $0x778] sm:$0xff] %v1000_v15  ;;  %v1002_v23 = vmax.f32 %v502_v18, %v752_v20  ;;  %v1003_v24 = vmax.f32 %v503_v21, %v753_v22  ;;  %v504_v25 = vld [vmem:[%s1801_s28 + $0x798] sm:$0xff]  ;;  %v505_v27 = vld [vmem:[%s1801_s28 + $0x7a0] sm:$0xff]  ;;  %v506_v30 = vld [vmem:[%s1801_s28 + $0x7a8] sm:$0xff] }
 0x127   : > { %v754_v26 = vld [vmem:[%s1808_s26 + $0x798] sm:$0xff]  ;;  %1251 = vst [vmem:[%s1823_s21 + $0x780] sm:$0xff] %v1001_v19  ;;  %v755_v29 = vld [vmem:[%s1808_s26 + $0x7a0] sm:$0xff]  ;;  %v756_v31 = vld [vmem:[%s1808_s26 + $0x7a8] sm:$0xff] }
 0x128   : > { %v1004_v28 = vmax.f32 %v504_v25, %v754_v26  ;;  %1252 = vst [vmem:[%s1823_s21 + $0x788] sm:$0xff] %v1002_v23  ;;  %1253 = vst [vmem:[%s1823_s21 + $0x790] sm:$0xff] %v1003_v24  ;;  %v1005_v32 = vmax.f32 %v505_v27, %v755_v29  ;;  %v1006_v33 = vmax.f32 %v506_v30, %v756_v31  ;;  %v507_v34 = vld [vmem:[%s1801_s28 + $0x7b0] sm:$0xff]  ;;  %v508_v36 = vld [vmem:[%s1801_s28 + $0x7b8] sm:$0xff] }
 0x129   : > { %v757_v35 = vld [vmem:[%s1808_s26 + $0x7b0] sm:$0xff]  ;;  %v758_v38 = vld [vmem:[%s1808_s26 + $0x7b8] sm:$0xff]  ;;  %v509_v39 = vld [vmem:[%s1801_s28 + $0x7c0] sm:$0xff] }
 0x12a   : > { %1254 = vst [vmem:[%s1823_s21 + $0x798] sm:$0xff] %v1004_v28  ;;  %v1007_v37 = vmax.f32 %v507_v34, %v757_v35  ;;  %v759_v40 = vld [vmem:[%s1808_s26 + $0x7c0] sm:$0xff]  ;;  %1255 = vst [vmem:[%s1823_s21 + $0x7a0] sm:$0xff] %v1005_v32  ;;  %v1008_v41 = vmax.f32 %v508_v36, %v758_v38  ;;  %v510_v43 = vld [vmem:[%s1801_s28 + $0x7c8] sm:$0xff]  ;;  %1268 = sbr.rel (!%p1704_p9) target bundleno = 331 (0x14b), region = 40 }
 0x12b   : > { %1256 = vst [vmem:[%s1823_s21 + $0x7a8] sm:$0xff] %v1006_v33  ;;  %v1009_v42 = vmax.f32 %v509_v39, %v759_v40  ;;  %v760_v44 = vld [vmem:[%s1808_s26 + $0x7c8] sm:$0xff] }
 0x12c   : > { %1257 = vst [vmem:[%s1823_s21 + $0x7b0] sm:$0xff] %v1007_v37  ;;  %v1010_v45 = vmax.f32 %v510_v43, %v760_v44  ;;  %1258 = vst [vmem:[%s1823_s21 + $0x7b8] sm:$0xff] %v1008_v41 }
 0x12d   : > { %1259 = vst [vmem:[%s1823_s21 + $0x7c0] sm:$0xff] %v1009_v42 }
 0x12e   : > { %1260 = vst [vmem:[%s1823_s21 + $0x7c8] sm:$0xff] %v1010_v45 }
 0x12f   : > { %s2652_s30 = smov (!%p1272_p8, %s1271_s30), 25 }
 0x130   : > { %s2570_s4 = smul.u32 1280, %s2652_s30 }
 0x132   : > { %s1277_s5 = ssub.s32 32000, %s2570_s4 }
 0x133   : > { %1278 = vsyncadd %s1262_s3, %s1277_s5  ;;  %p1415_p4 = scmp.ne.s32.totalorder %s2570_s4, 0  ;;  %s1435_s22 = smul.u32 32000, %s1619_s12 }
 0x134   : > { %s1285_s7 = sshll.u32 %s1823_s21, 4  ;;  %s1635_s29 = smov [#allocation7]   ;;  %s2583_s7 = int_to_ptr.vmem [resolvable:$true] %s1285_s7 }
 0x135   : > { %s2581_s18 = scalar_lea.hbm %s2634_s2, %s1435_s22  ;;  %s1543_s25 = scalar_lea.vmem %s2583_s7, %s2570_s4 }
 0x136   : > { %p1544_p9 = scmp.ne.s32.totalorder %s2583_s7, %s1543_s25  ;;  %s1547_s6 = sshll.u32 %s1635_s29, 4  ;;  %s1548_s6 = int_to_ptr.vmem [resolvable:$false] %s1547_s6 }
 0x137   : > { %s1549_s12 = scalar_lea.vmem %s1548_s6, 64000  ;;  %p1550_p12 = scmp.lt.s32.totalorder %s2583_s7, %s1548_s6 }
 0x138   : > { %p1545_p7 = pnand %p1544_p9, %p1415_p4  ;;  %p1551_p13 = scmp.lt.s32.totalorder %s1549_s12, %s1543_s25 }
 0x13a   : > { %p1546_p10 = pneg %p1545_p7  ;;  %p1552_p1 = por %p1551_p13, %p1550_p12 }
 0x13c   : > { %p1553_p2 = pnand %p1552_p1, %p1546_p10 }
 0x13e   : > { %1556 = shalt.err (!%p1553_p2)
}
 0x13f   : > { %s1557_s15 = scalar_lea.hbm %s2581_s18, %s2570_s4  ;;  %s1561_s26 = scalar_lea.hbm %s2634_s2, 163840 }
 0x140   : > { %p1558_p11 = scmp.ne.s32.totalorder %s2581_s18, %s1557_s15  ;;  %p1562_p5 = scmp.lt.s32.totalorder %s2581_s18, %s2634_s2 }
 0x141   : > { %p1563_p6 = scmp.lt.s32.totalorder %s1561_s26, %s1557_s15 }
 0x142   : > { %p1559_p0 = pnand %p1558_p11, %p1415_p4 }
 0x143   : > { %p1564_p8 = por %p1563_p6, %p1562_p5 }
 0x144   : > { %p1560_p3 = pneg %p1559_p0 }
 0x146   : > { %p1565_p9 = pnand %p1564_p8, %p1560_p3 }
 0x148   : > { %1568 = shalt.err (!%p1565_p9)
}
 0x149   : > { %s1636_s30 = smov 1280   ;;  %s1637_s5 = smov 80  }
 0x14a   : > { %1291 = dma.vmem_to_hbm [thread:$0]  (%p1415_p4), %s2583_s7, %s2570_s4, %s2581_s18, %s1262_s3, %s1636_s30, %s1636_s30, %s1637_s5  }
 0x14b PF: > { %p1436_p7 = scmp.ge.s32.totalorder %s1627_s14, 2  ;;  %s1300_s22 = sand.u32 1, %s1607_s9  }
 0x14c   : > { %p2639_p10 = scmp.ne.s32.totalorder %s2638_s24, 0  ;;  %s1301_s8 = scalar_lea.sflag [#allocation4], %s1300_s22 }
 0x14e   : > { %p1430_p12 = pnand %p1436_p7, %p2639_p10 }
 0x150   : > { %p1431_p13 = pneg %p1430_p12 }
 0x152   : > { %1602 = dma.done.wait (%p1431_p13), %s1301_s8, 32000  }
 0x153   : > { %1604 = vsyncadd (%p1431_p13), %s1301_s8, 4294935296  ;;  %s21_s14 = sadd.s32 1, %s1627_s14   ;;  %s2640_s9 = smov %s1611_s10 }
 0x154   : > { %p18_p1 = scmp.ge.s32.totalorder %s21_s14, 8   ;;  %s2641_s10 = smov %s1615_s11 }
 0x155   : > { %s2642_s11 = smov %s1709_s23  ;;  %s2643_s12 = smov %s1623_s13 }
 0x156   : > { %s2644_s13 = smov %s2646_s17  ;;  %20 = sbr.rel (!%p18_p1) target bundleno = 8 (0x8), region = 86 }
 0x15b   :  { %1306 = vsyncpa [#allocation3], 1 }
 0x15c   :  { %1308 = vsyncpa [#allocation3 + $0x1], 1 }
 0x15d   :  { %1309 = vsyncpa [#allocation6], 1 }
 0x15e   :  { %1311 = vsyncpa [#allocation6 + $0x1], 1 }
 0x15f   :  { %1312 = vsyncpa [#allocation4], 1 }
 0x160   :  { %1314 = vsyncpa [#allocation4 + $0x1], 1 }

</bundles_post_ra>
